<compile_context>
chip_gen: v5e
topology: v5e:2x2
jax: 0.10.0
libtpu: 0.0.40
codegen_flags: <defaults>
</compile_context>

<pallas_src>
import jax
import jax.numpy as jnp
from jax.experimental import pallas as pl
from jax.experimental.pallas import tpu as pltpu


def _stn3d_trunk_kernel(x_ref, w1_ref, b1_ref, w2_ref, b2_ref, w3_ref,
                        o_ref, feat_ref):
    n = pl.program_id(1)

    @pl.when(n == 0)
    def _init():
        feat_ref[...] = jnp.full(feat_ref.shape, -jnp.inf, dtype=feat_ref.dtype)

    # ---- conv1 (K=3): three VPU broadcast FMAs, no MXU ---------------------
    h = (b1_ref[...]
         + w1_ref[:, 0:1] * x_ref[0:1, :]
         + w1_ref[:, 1:2] * x_ref[1:2, :]
         + w1_ref[:, 2:3] * x_ref[2:3, :])                        # (64, TN) f32
    h = jnp.maximum(h, 0.0)

    # ---- conv2: MXU, bf16 operands, f32 accumulate -------------------------
    h = jnp.dot(w2_ref[...], h.astype(w2_ref.dtype),
                preferred_element_type=jnp.float32) + b2_ref[...]  # (128, TN)
    h = jnp.maximum(h, 0.0)

    # ---- conv3 (BN scale folded; bias + ReLU applied post-pool outside) ----
    z = jnp.dot(w3_ref[...], h.astype(w3_ref.dtype),
                preferred_element_type=jnp.float32)               # (1024, TN)

    # ---- running max-pool: pure-VPU elementwise max into (1024, 128) acc ---
    tn = z.shape[1]
    acc = feat_ref[...]
    for k in range(tn // 128):                                    # static unroll
        acc = jnp.maximum(acc, z[:, k * 128:(k + 1) * 128])
    feat_ref[...] = acc

    # ---- single XLU lane-reduce, once per batch ----------------------------
    @pl.when(n == pl.num_programs(1) - 1)
    def _finalize():
        o_ref[...] = jnp.max(feat_ref[...], axis=1, keepdims=True).astype(o_ref.dtype)


def _fold_bn(w, b, gamma, beta, mean, var, eps):
    """Fold eval-mode BatchNorm into a (C_out, C_in) weight + (C_out,) bias."""
    s = gamma / jnp.sqrt(var + eps)
    return w * s[:, None], s * (b - mean) + beta


def _pick_point_tile(n_points):
    """Pick tile TN (multiple of 128) and the padded point count it implies."""
    best = None
    for c in (1024, 512, 256, 128):
        padded = -(-n_points // c) * c
        if best is None or padded < best[0]:
            best = (padded, c)
    return best[1], best[0]


def stn3d_pallas(x, params, *, eps=1e-5, use_bf16=True):
    """
    x      : (B, 3, N) float32 point cloud (PyTorch NCL layout, kept as-is)
    params : dict of conv/fc weights + BatchNorm running stats
    returns: (B, 3, 3) transform matrices
    """
    B, c_in, N = x.shape
    assert c_in == 3, "STN3d expects 3 input channels"

    # ---- one-time parameter prep (BN folding, identity fold) ---------------
    w1, b1 = _fold_bn(params["conv1_w"][:, :, 0], params["conv1_b"],
                      params["bn1_g"], params["bn1_b"], params["bn1_m"], params["bn1_v"], eps)
    w2, b2 = _fold_bn(params["conv2_w"][:, :, 0], params["conv2_b"],
                      params["bn2_g"], params["bn2_b"], params["bn2_m"], params["bn2_v"], eps)
    w3, b3 = _fold_bn(params["conv3_w"][:, :, 0], params["conv3_b"],
                      params["bn3_g"], params["bn3_b"], params["bn3_m"], params["bn3_v"], eps)
    w4, b4 = _fold_bn(params["fc1_w"], params["fc1_b"],
                      params["bn4_g"], params["bn4_b"], params["bn4_m"], params["bn4_v"], eps)
    w5, b5 = _fold_bn(params["fc2_w"], params["fc2_b"],
                      params["bn5_g"], params["bn5_b"], params["bn5_m"], params["bn5_v"], eps)
    iden = jnp.array([1, 0, 0, 0, 1, 0, 0, 0, 1], dtype=jnp.float32)
    w6 = params["fc3_w"]
    b6 = params["fc3_b"] + iden                                   # fold identity add

    mxu_dtype = jnp.bfloat16 if use_bf16 else jnp.float32
    w2k = w2.astype(mxu_dtype)                                    # MXU operands
    w3k = w3.astype(mxu_dtype)
    b1c = b1[:, None]                                             # (64, 1)
    b2c = b2[:, None]                                             # (128, 1)

    # ---- point-axis tiling: pad N to a multiple of the tile with *real*
    # (replicated) points, so the max-pool is unaffected ---------------------
    tn, n_pad = _pick_point_tile(N)
    if n_pad != N:
        x = jnp.pad(x, ((0, 0), (0, 0), (0, n_pad - N)), mode="edge")
    n_tiles = n_pad // tn

    def const_spec(arr):
        return pl.BlockSpec(arr.shape, lambda b, n: (0, 0))

    pooled = pl.pallas_call(
        _stn3d_trunk_kernel,
        out_shape=jax.ShapeDtypeStruct((B, 1024, 1), jnp.float32),
        grid_spec=pltpu.PrefetchScalarGridSpec(
            num_scalar_prefetch=0,
            grid=(B, n_tiles),                                    # reduction axis last
            in_specs=[
                pl.BlockSpec((None, 3, tn), lambda b, n: (b, 0, n)),   # x tile
                const_spec(w1), const_spec(b1c),
                const_spec(w2k), const_spec(b2c),
                const_spec(w3k),
            ],
            out_specs=pl.BlockSpec((None, 1024, 1), lambda b, n: (b, 0, 0)),
            scratch_shapes=[pltpu.VMEM((1024, 128), jnp.float32)],     # max-pool acc
        ),
        compiler_params=pltpu.CompilerParams(
            dimension_semantics=("parallel", "arbitrary"),
            vmem_limit_bytes=32 * 1024 * 1024),
    )(x, w1, b1c, w2k, b2c, w3k)

    # ---- fc head: tiny GEMV-shaped matmuls, run in plain XLA (f32) ---------
    hp = jax.lax.Precision.HIGHEST
    f = jnp.maximum(pooled.reshape(B, 1024) + b3[None, :], 0.0)   # conv3 bias+BN shift+ReLU post-pool
    f = jnp.maximum(jnp.dot(f, w4.T, precision=hp) + b4[None, :], 0.0)
    f = jnp.maximum(jnp.dot(f, w5.T, precision=hp) + b5[None, :], 0.0)
    f = jnp.dot(f, w6.T, precision=hp) + b6[None, :]
    return f.reshape(B, 3, 3)


def stn3d_ref(x, params, *, eps=1e-5):
    """Pure-JAX reference mirroring the PyTorch forward in eval mode."""
    hp = jax.lax.Precision.HIGHEST

    def bn_ncl(h, g, b, m, v):
        return g[None, :, None] * (h - m[None, :, None]) / jnp.sqrt(v[None, :, None] + eps) \
               + b[None, :, None]

    def bn_nc(h, g, b, m, v):
        return g[None, :] * (h - m[None, :]) / jnp.sqrt(v[None, :] + eps) + b[None, :]

    h = jnp.einsum("oi,bin->bon", params["conv1_w"][:, :, 0], x, precision=hp) \
        + params["conv1_b"][None, :, None]
    h = jnp.maximum(bn_ncl(h, params["bn1_g"], params["bn1_b"], params["bn1_m"], params["bn1_v"]), 0.0)
    h = jnp.einsum("oi,bin->bon", params["conv2_w"][:, :, 0], h, precision=hp) \
        + params["conv2_b"][None, :, None]
    h = jnp.maximum(bn_ncl(h, params["bn2_g"], params["bn2_b"], params["bn2_m"], params["bn2_v"]), 0.0)
    h = jnp.einsum("oi,bin->bon", params["conv3_w"][:, :, 0], h, precision=hp) \
        + params["conv3_b"][None, :, None]
    h = jnp.maximum(bn_ncl(h, params["bn3_g"], params["bn3_b"], params["bn3_m"], params["bn3_v"]), 0.0)

    f = jnp.max(h, axis=2)                                        # (B, 1024)

    f = jnp.einsum("bi,oi->bo", f, params["fc1_w"], precision=hp) + params["fc1_b"][None, :]
    f = jnp.maximum(bn_nc(f, params["bn4_g"], params["bn4_b"], params["bn4_m"], params["bn4_v"]), 0.0)
    f = jnp.einsum("bi,oi->bo", f, params["fc2_w"], precision=hp) + params["fc2_b"][None, :]
    f = jnp.maximum(bn_nc(f, params["bn5_g"], params["bn5_b"], params["bn5_m"], params["bn5_v"]), 0.0)
    f = jnp.einsum("bi,oi->bo", f, params["fc3_w"], precision=hp) + params["fc3_b"][None, :]

    iden = jnp.array([1, 0, 0, 0, 1, 0, 0, 0, 1], dtype=jnp.float32)
    return (f + iden[None, :]).reshape(-1, 3, 3)


def _make_params(key):
    keys = jax.random.split(key, 32)
    ki = iter(keys)

    def w(shape, scale=0.1):
        return jax.random.normal(next(ki), shape, dtype=jnp.float32) * scale

    def bn(c):
        return dict(
            g=jax.random.uniform(next(ki), (c,), jnp.float32, 0.5, 1.5),
            b=w((c,), 0.1),
            m=w((c,), 0.1),
            v=jax.random.uniform(next(ki), (c,), jnp.float32, 0.5, 1.5),
        )

    p = {
        "conv1_w": w((64, 3, 1)),     "conv1_b": w((64,)),
        "conv2_w": w((128, 64, 1)),   "conv2_b": w((128,)),
        "conv3_w": w((1024, 128, 1)), "conv3_b": w((1024,)),
        "fc1_w": w((512, 1024)),      "fc1_b": w((512,)),
        "fc2_w": w((256, 512)),       "fc2_b": w((256,)),
        "fc3_w": w((9, 256)),         "fc3_b": w((9,)),
    }
    for i, c in zip((1, 2, 3, 4, 5), (64, 128, 1024, 512, 256)):
        d = bn(c)
        p[f"bn{i}_g"], p[f"bn{i}_b"], p[f"bn{i}_m"], p[f"bn{i}_v"] = d["g"], d["b"], d["m"], d["v"]
    return p


if __name__ == "__main__":
    B, N = 2, 256  # STN3d input: (batch, 3, num_points)

    key = jax.random.PRNGKey(0)
    kx, kp = jax.random.split(key)
    x = jax.random.normal(kx, (B, 3, N), dtype=jnp.float32)
    params = _make_params(kp)

    y_ref = stn3d_ref(x, params)

    # Pure-f32 kernel path: tight structural validation.
    y32 = stn3d_pallas(x, params, use_bf16=False)
    jax.block_until_ready(y32)
    assert y32.shape == (B, 3, 3), y32.shape
    err32 = float(jnp.max(jnp.abs(y32 - y_ref)))
    assert jnp.allclose(y32, y_ref, atol=2e-3, rtol=2e-3), f"f32 path mismatch: {err32}"

    # bf16-MXU fast path: looser tolerance (bf16 operand quantization, f32 acc).
    y = stn3d_pallas(x, params, use_bf16=True)
    jax.block_until_ready(y)
    errbf = float(jnp.max(jnp.abs(y - y_ref)))
    assert jnp.allclose(y, y_ref, atol=5e-2, rtol=5e-2), f"bf16 path mismatch: {errbf}"

    # Non-multiple-of-128 point count: exercises the edge-padding path.
    N2 = 250
    x2 = jax.random.normal(jax.random.PRNGKey(1), (B, 3, N2), dtype=jnp.float32)
    y2 = stn3d_pallas(x2, params, use_bf16=True)
    jax.block_until_ready(y2)
    y2_ref = stn3d_ref(x2, params)
    err2 = float(jnp.max(jnp.abs(y2 - y2_ref)))
    assert jnp.allclose(y2, y2_ref, atol=5e-2, rtol=5e-2), f"padded-N mismatch: {err2}"

    print("KERNEL_OK")
</pallas_src>

<mosaic_0001>
module attributes {stable_mosaic.version = 11 : i64} {
  func.func @_stn3d_trunk_kernel(%arg0: i32, %arg1: i32, %arg2: memref<1x3x256xf32, #tpu.memory_space<vmem>>, %arg3: memref<64x3xf32, #tpu.memory_space<vmem>>, %arg4: memref<64x1xf32, #tpu.memory_space<vmem>>, %arg5: memref<128x64xf32, #tpu.memory_space<vmem>>, %arg6: memref<128x1xf32, #tpu.memory_space<vmem>>, %arg7: memref<1024x128xf32, #tpu.memory_space<vmem>>, %arg8: memref<1x1024x1xf32, #tpu.memory_space<vmem>>, %arg9: memref<1024x128xf32, #tpu.memory_space<vmem>>) attributes {dimension_semantics = [#tpu.dimension_semantics<parallel>, #tpu.dimension_semantics<arbitrary>], iteration_bounds = array<i64: 2, 1>, scalar_prefetch = 0 : i64, scratch_operands = 1 : i64, tpu.core_type = #tpu.core_type<tc>, window_params = [{transform_indices = @transform_0, window_bounds = array<i64: 1, 3, 256>}, {pipeline_mode = #tpu.pipeline_mode<synchronous>, transform_indices = @transform_1, window_bounds = array<i64: 64, 3>}, {pipeline_mode = #tpu.pipeline_mode<synchronous>, transform_indices = @transform_2, window_bounds = array<i64: 64, 1>}, {pipeline_mode = #tpu.pipeline_mode<synchronous>, transform_indices = @transform_3, window_bounds = array<i64: 128, 64>}, {pipeline_mode = #tpu.pipeline_mode<synchronous>, transform_indices = @transform_4, window_bounds = array<i64: 128, 1>}, {pipeline_mode = #tpu.pipeline_mode<synchronous>, transform_indices = @transform_5, window_bounds = array<i64: 1024, 128>}, {transform_indices = @transform_6, window_bounds = array<i64: 1, 1024, 1>}]} {
    %c0_i32 = arith.constant 0 : i32
    %0 = arith.cmpi eq, %arg1, %c0_i32 : i32
    %1 = arith.extui %0 : i1 to i32
    %c0_i32_0 = arith.constant 0 : i32
    %2 = arith.cmpi ne, %1, %c0_i32_0 : i32
    scf.if %2 {
      %cst_30 = arith.constant 0xFF800000 : f32
      %46 = vector.broadcast %cst_30 : f32 to vector<1024x128xf32>
      %c0_31 = arith.constant 0 : index
      %c0_32 = arith.constant 0 : index
      %47 = vector.load %arg9[%c0_31, %c0_32] : memref<1024x128xf32, #tpu.memory_space<vmem>>, vector<1024x128xf32>
      tpu.vector_store %arg9[%c0_31, %c0_32], %46 {strides = array<i32>} : memref<1024x128xf32, #tpu.memory_space<vmem>>, vector<1024x128xf32>,
    } else {
    }
    %c0 = arith.constant 0 : index
    %c0_1 = arith.constant 0 : index
    %3 = vector.load %arg4[%c0, %c0_1] : memref<64x1xf32, #tpu.memory_space<vmem>>, vector<64x1xf32>
    %c0_2 = arith.constant 0 : index
    %c0_3 = arith.constant 0 : index
    %4 = vector.load %arg3[%c0_2, %c0_3] : memref<64x3xf32, #tpu.memory_space<vmem>>, vector<64x1xf32>
    %c0_4 = arith.constant 0 : index
    %c0_5 = arith.constant 0 : index
    %c0_6 = arith.constant 0 : index
    %5 = vector.load %arg2[%c0_4, %c0_5, %c0_6] : memref<1x3x256xf32, #tpu.memory_space<vmem>>, vector<1x1x256xf32>
    %6 = vector.shape_cast %5 : vector<1x1x256xf32> to vector<1x256xf32>
    %7 = vector.broadcast %4 : vector<64x1xf32> to vector<64x256xf32>
    %8 = vector.broadcast %6 : vector<1x256xf32> to vector<64x256xf32>
    %9 = arith.mulf %7, %8 : vector<64x256xf32>
    %10 = vector.broadcast %3 : vector<64x1xf32> to vector<64x256xf32>
    %11 = arith.addf %10, %9 : vector<64x256xf32>
    %c0_7 = arith.constant 0 : index
    %c1 = arith.constant 1 : index
    %12 = vector.load %arg3[%c0_7, %c1] : memref<64x3xf32, #tpu.memory_space<vmem>>, vector<64x1xf32>
    %c0_8 = arith.constant 0 : index
    %c1_9 = arith.constant 1 : index
    %c0_10 = arith.constant 0 : index
    %13 = vector.load %arg2[%c0_8, %c1_9, %c0_10] : memref<1x3x256xf32, #tpu.memory_space<vmem>>, vector<1x1x256xf32>
    %14 = vector.shape_cast %13 : vector<1x1x256xf32> to vector<1x256xf32>
    %15 = vector.broadcast %12 : vector<64x1xf32> to vector<64x256xf32>
    %16 = vector.broadcast %14 : vector<1x256xf32> to vector<64x256xf32>
    %17 = arith.mulf %15, %16 : vector<64x256xf32>
    %18 = arith.addf %11, %17 : vector<64x256xf32>
    %c0_11 = arith.constant 0 : index
    %c2 = arith.constant 2 : index
    %19 = vector.load %arg3[%c0_11, %c2] : memref<64x3xf32, #tpu.memory_space<vmem>>, vector<64x1xf32>
    %c0_12 = arith.constant 0 : index
    %c2_13 = arith.constant 2 : index
    %c0_14 = arith.constant 0 : index
    %20 = vector.load %arg2[%c0_12, %c2_13, %c0_14] : memref<1x3x256xf32, #tpu.memory_space<vmem>>, vector<1x1x256xf32>
    %21 = vector.shape_cast %20 : vector<1x1x256xf32> to vector<1x256xf32>
    %22 = vector.broadcast %19 : vector<64x1xf32> to vector<64x256xf32>
    %23 = vector.broadcast %21 : vector<1x256xf32> to vector<64x256xf32>
    %24 = arith.mulf %22, %23 : vector<64x256xf32>
    %25 = arith.addf %18, %24 : vector<64x256xf32>
    %cst = arith.constant 0.000000e+00 : f32
    %26 = vector.broadcast %cst : f32 to vector<64x256xf32>
    %27 = arith.maximumf %25, %26 : vector<64x256xf32>
    %c0_15 = arith.constant 0 : index
    %c0_16 = arith.constant 0 : index
    %28 = vector.load %arg5[%c0_15, %c0_16] : memref<128x64xf32, #tpu.memory_space<vmem>>, vector<128x64xf32>
    %cst_17 = arith.constant dense<0.000000e+00> : vector<128x256xf32>
    %29 = tpu.matmul %28, %27, %cst_17 {dimension_numbers = #tpu.dot_dimension_numbers<[1], [0], [0], [1], [0, 0, 1, 1], [], []>} : vector<128x64xf32>, vector<64x256xf32>, vector<128x256xf32> -> vector<128x256xf32>
    %c0_18 = arith.constant 0 : index
    %c0_19 = arith.constant 0 : index
    %30 = vector.load %arg6[%c0_18, %c0_19] : memref<128x1xf32, #tpu.memory_space<vmem>>, vector<128x1xf32>
    %31 = vector.broadcast %30 : vector<128x1xf32> to vector<128x256xf32>
    %32 = arith.addf %29, %31 : vector<128x256xf32>
    %cst_20 = arith.constant 0.000000e+00 : f32
    %33 = vector.broadcast %cst_20 : f32 to vector<128x256xf32>
    %34 = arith.maximumf %32, %33 : vector<128x256xf32>
    %c0_21 = arith.constant 0 : index
    %c0_22 = arith.constant 0 : index
    %35 = vector.load %arg7[%c0_21, %c0_22] : memref<1024x128xf32, #tpu.memory_space<vmem>>, vector<1024x128xf32>
    %cst_23 = arith.constant dense<0.000000e+00> : vector<1024x256xf32>
    %36 = tpu.matmul %35, %34, %cst_23 {dimension_numbers = #tpu.dot_dimension_numbers<[1], [0], [0], [1], [0, 0, 1, 1], [], []>} : vector<1024x128xf32>, vector<128x256xf32>, vector<1024x256xf32> -> vector<1024x256xf32>
    %c0_24 = arith.constant 0 : index
    %c0_25 = arith.constant 0 : index
    %37 = vector.load %arg9[%c0_24, %c0_25] : memref<1024x128xf32, #tpu.memory_space<vmem>>, vector<1024x128xf32>
    %38 = vector.extract_strided_slice %36 {offsets = [0, 0], sizes = [1024, 128], strides = [1, 1]} : vector<1024x256xf32> to vector<1024x128xf32>
    %39 = arith.maximumf %37, %38 : vector<1024x128xf32>
    %40 = vector.extract_strided_slice %36 {offsets = [0, 128], sizes = [1024, 128], strides = [1, 1]} : vector<1024x256xf32> to vector<1024x128xf32>
    %41 = arith.maximumf %39, %40 : vector<1024x128xf32>
    %c0_26 = arith.constant 0 : index
    %c0_27 = arith.constant 0 : index
    %42 = vector.load %arg9[%c0_26, %c0_27] : memref<1024x128xf32, #tpu.memory_space<vmem>>, vector<1024x128xf32>
    tpu.vector_store %arg9[%c0_26, %c0_27], %41 {strides = array<i32>} : memref<1024x128xf32, #tpu.memory_space<vmem>>, vector<1024x128xf32>,
    %c0_i32_28 = arith.constant 0 : i32
    %43 = arith.cmpi eq, %arg1, %c0_i32_28 : i32
    %44 = arith.extui %43 : i1 to i32
    %c0_i32_29 = arith.constant 0 : i32
    %45 = arith.cmpi ne, %44, %c0_i32_29 : i32
    scf.if %45 {
      %c0_30 = arith.constant 0 : index
      %c0_31 = arith.constant 0 : index
      %46 = vector.load %arg9[%c0_30, %c0_31] : memref<1024x128xf32, #tpu.memory_space<vmem>>, vector<1024x128xf32>
      %cst_32 = arith.constant dense<0xFF800000> : vector<1024xf32>
      %47 = vector.multi_reduction <maximumf>, %46, %cst_32 [1] : vector<1024x128xf32> to vector<1024xf32>
      %48 = vector.shape_cast %47 : vector<1024xf32> to vector<1024x1xf32>
      %c0_33 = arith.constant 0 : index
      %c0_34 = arith.constant 0 : index
      %c0_35 = arith.constant 0 : index
      %49 = vector.load %arg8[%c0_33, %c0_34, %c0_35] : memref<1x1024x1xf32, #tpu.memory_space<vmem>>, vector<1x1024x1xf32>
      %50 = vector.shape_cast %49 : vector<1x1024x1xf32> to vector<1024x1xf32>
      %51 = vector.shape_cast %48 : vector<1024x1xf32> to vector<1x1024x1xf32>
      tpu.vector_store %arg8[%c0_33, %c0_34, %c0_35], %51 {strides = array<i32>} : memref<1x1024x1xf32, #tpu.memory_space<vmem>>, vector<1x1024x1xf32>,
    } else {
    }
    return
  }
  func.func @transform_0(%arg0: i32, %arg1: i32) -> (i32, i32, i32) {
    %c0_i32 = arith.constant 0 : i32
    %c0_i32_0 = arith.constant 0 : i32
    return %arg0, %c0_i32, %arg1 : i32, i32, i32
  }
  func.func @transform_1(%arg0: i32, %arg1: i32) -> (i32, i32) {
    %c0_i32 = arith.constant 0 : i32
    %c0_i32_0 = arith.constant 0 : i32
    %c0_i32_1 = arith.constant 0 : i32
    return %c0_i32, %c0_i32_0 : i32, i32
  }
  func.func @transform_2(%arg0: i32, %arg1: i32) -> (i32, i32) {
    %c0_i32 = arith.constant 0 : i32
    %c0_i32_0 = arith.constant 0 : i32
    %c0_i32_1 = arith.constant 0 : i32
    return %c0_i32, %c0_i32_0 : i32, i32
  }
  func.func @transform_3(%arg0: i32, %arg1: i32) -> (i32, i32) {
    %c0_i32 = arith.constant 0 : i32
    %c0_i32_0 = arith.constant 0 : i32
    %c0_i32_1 = arith.constant 0 : i32
    return %c0_i32, %c0_i32_0 : i32, i32
  }
  func.func @transform_4(%arg0: i32, %arg1: i32) -> (i32, i32) {
    %c0_i32 = arith.constant 0 : i32
    %c0_i32_0 = arith.constant 0 : i32
    %c0_i32_1 = arith.constant 0 : i32
    return %c0_i32, %c0_i32_0 : i32, i32
  }
  func.func @transform_5(%arg0: i32, %arg1: i32) -> (i32, i32) {
    %c0_i32 = arith.constant 0 : i32
    %c0_i32_0 = arith.constant 0 : i32
    %c0_i32_1 = arith.constant 0 : i32
    return %c0_i32, %c0_i32_0 : i32, i32
  }
  func.func @transform_6(%arg0: i32, %arg1: i32) -> (i32, i32, i32) {
    %c0_i32 = arith.constant 0 : i32
    %c0_i32_0 = arith.constant 0 : i32
    %c0_i32_1 = arith.constant 0 : i32
    return %arg0, %c0_i32, %c0_i32_0 : i32, i32, i32
  }
}

</mosaic_0001>

<bundles_post_ra>
// kernel: tpu_custom_call.1
= control target key start
LH: loop header
LB: loop body
LE: loop exit
PB: predicated region body
PF: predicated region fallthrough
CT: control target
= control target key end

     0   :  { %11 = vsyncpa [#allocation4], 0  ;;  %s3329_s21 = smov 0   ;;  %s3331_s22 = smov 0   ;;  %s3957_s0 = inlined_call_operand.vmem [shape: f32[2,3,256], index: 0, kind: input, shape index: {}]   ;;  %s3958_s1 = inlined_call_operand.vmem [shape: f32[64,3], index: 1, kind: input, shape index: {}]   ;;  %s3959_s2 = inlined_call_operand.vmem [shape: f32[64,1], index: 2, kind: input, shape index: {}]   ;;  %s3960_s3 = inlined_call_operand.vmem [shape: f32[128,64], index: 3, kind: input, shape index: {}]   ;;  %s3961_s4 = inlined_call_operand.vmem [shape: f32[128,1], index: 4, kind: input, shape index: {}]   ;;  %s3962_s5 = inlined_call_operand.hbm [shape: f32[1024,128], index: 5, kind: input, shape index: {}]   ;;  %s3963_s6 = inlined_call_operand.vmem [shape: f32[2,1024,1], index: 6, kind: output, shape index: {}]  }
   0x1   :  { %s3333_s23 = smov 0  }
   0x2 LB: > { %s3084_s24 = sadd.s32 4294967295, %s3286_s23   ;;  %s29_s25 = sadd.s32 1, %s3282_s22  ;;  %s3286_s23 = sphi %s3333_s23, %s17_s23   ;;  %s3282_s22 = sphi %s3331_s22, %s3965_s22   ;;  %s3278_s21 = sphi %s3329_s21, %s3964_s21  }
   0x3   : > { %p31_p0 = scmp.ge.s32.totalorder %s29_s25, 2  ;;  %p3086_p1 = scmp.ge.s32.totalorder %s3286_s23, 1 }
   0x4   : > { %p193_p2 = scmp.lt.s32.totalorder %s3286_s23, 3  ;;  %p3173_p4 = scmp.eq.s32.totalorder %s3084_s24, 0 }
   0x5   : > { %s3967_s25 = smov (%p31_p0, %s29_s25), 0  ;;  %s216_s28 = sshll.u32 %s3962_s5, 4  ;;  %s217_s28 = int_to_ptr.hbm [resolvable:$true] %s216_s28 }
   0x6   : > { %p194_p3 = pnand %p3086_p1, %p193_p2  ;;  %s3288_s29 = smov [#allocation3]  }
   0x7   : > { %s218_s30 = sshll.u32 %s3288_s29, 4  ;;  %s3289_s7 = smov 128   ;;  %s219_s30 = int_to_ptr.vmem [resolvable:$true] %s218_s30 }
   0x8   : > { %p3169_p5 = pneg %p194_p3  ;;  %s3290_s8 = smov 8  }
   0x9   : > { %247 = sbr.rel (%p194_p3) target bundleno = 1335 (0x537), region = 44 }
   0xa   : > { %p3170_p6 = pnand %p3173_p4, %p3169_p5 }
   0xc   : > { %3172 = dma.hbm_to_vmem [thread:$0]  (!%p3170_p6), %s217_s28, 16384, %s219_s30, [#allocation4], %s3289_s7, %s3289_s7, %s3290_s8  }
   0xe   : > { %3273 = dma.done.wait (%p3173_p4), [#allocation4], 16384  }
   0xf   : > { %3275 = vsyncadd (%p3173_p4), [#allocation4], 4294950912  ;;  %v3291_v0 = vmov 1   ;;  %v3292_v1 = vmov 0   ;;  %v443_v2 = vld [vmem:[%s3958_s1 + $0x30] sm:$0xff]  ;;  %v442_v3 = vld [vmem:[%s3958_s1 + $0x28] sm:$0xff] }
  0x10   : > { %3208 = vset.pattern.permute.xlu0 %v3291_v0  ;;  %3207 = vset.pattern.permute.xlu2 %v3292_v1  ;;  %v436_v4 = vld [vmem:[%s3959_s2 + $0x38] sm:$0xff]  ;;  %v435_v5 = vld [vmem:[%s3959_s2 + $0x30] sm:$0xff]  ;;  %v441_v7 = vld [vmem:[%s3958_s1 + $0x20] sm:$0xff]  ;;  %v3293_v8 = vmov 2   ;;  %p283_p7 = scmp.lt.s32.totalorder %s3278_s21, 1  ;;  %vm833_vm0 = vcmask 523264  }
  0x11   : > { %3205 = vset.pattern.permute.xlu1 %v3292_v1  ;;  %590 = vperm.xlu0 %3208, %v443_v2   ;;  %v444_v6 = vld [vmem:[%s3958_s1 + $0x38] sm:$0xff]  ;;  %v439_v9 = vld [vmem:[%s3958_s1 + $0x10] sm:$0xff]  ;;  %v434_v10 = vld [vmem:[%s3959_s2 + $0x28] sm:$0xff]  ;;  %vm2873_vm1 = vcmask 7168  }
  0x12   : > { %473 = vperm.xlu2 %3207, %v442_v3   ;;  %544 = vperm.xlu1 %3205, %v436_v4   ;;  %v431_v11 = vld [vmem:[%s3959_s2 + $0x10] sm:$0xff]  ;;  %v433_v12 = vld [vmem:[%s3959_s2 + $0x20] sm:$0xff]  ;;  %v440_v13 = vld [vmem:[%s3958_s1 + $0x18] sm:$0xff]  ;;  %s3969_s21 = smov (!%p283_p7, %s3278_s21), 1 }
  0x13   : > { %v437_v14 = vld [vmem:[%s3958_s1] sm:$0xff]  ;;  %v432_v15 = vld [vmem:[%s3959_s2 + $0x18] sm:$0xff]  ;;  %v438_v16 = vld [vmem:[%s3958_s1 + $0x8] sm:$0xff]  ;;  %s3131_s24 = sshll.u32 %s3969_s21, 3  ;;  %s3132_s9 = sshll.u32 %s3969_s21, 10 }
  0x14   : > { %v430_v17 = vld [vmem:[%s3959_s2 + $0x8] sm:$0xff]  ;;  %v429_v18 = vld [vmem:[%s3959_s2] sm:$0xff]  ;;  %s290_s28 = scalar_lea.vmem %s3957_s0, %s3131_s24  ;;  %v751_v60 = vld [vmem:[%s3961_s4 + $0x70] sm:$0xff]  ;;  %s3690_s12 = scalar_lea.vmem %s3963_s6, %s3132_s9 }
  0x15   : > { %v445_v24 = vld [vmem:[%s290_s28] ss:$4 sm:$0x3]  ;;  %v3095_v29 = vld [vmem:[%s290_s28 + $0x1] ss:$4 sm:$0x3] }
  0x16   : > { %v3422_v26 = vperm.slane %v445_v24, 0  ;;  %v3424_v27 = vperm.slane %v445_v24, 1  ;;  %v3096_v33 = vld [vmem:[%s290_s28 + $0x2] ss:$4 sm:$0x3]  ;;  %v3428_v34 = vperm.slane %v3095_v29, 0 }
  0x17   : > { %v3430_v35 = vperm.slane %v3095_v29, 1  ;;  %v3432_v37 = vperm.slane %v3096_v33, 0  ;;  %v3434_v39 = vperm.slane %v3096_v33, 1 }
  0x19   : > { %3209 = vset.pattern.permute.xlu0 %v3292_v1 }
  0x1a   : > { %539 = vperm.xlu2 %3207, %v435_v5   ;;  %3206 = vset.pattern.permute.xlu1 %v3291_v0 }
  0x1b   : > { %483 = vperm.xlu0 %3209, %v444_v6   ;;  %594 = vperm.xlu1 %3206, %v444_v6  }
  0x22   : > { %468 = vperm.xlu2 %3207, %v441_v7  }
  0x23   : > { %478 = vperm.xlu0 %3209, %v443_v2   ;;  %3210 = vset.pattern.permute.xlu1 %v3293_v8 }
  0x24   : > { %665 = vperm.xlu1 %3210, %v444_v6  }
  0x2a   : > { %3212 = vset.pattern.permute.xlu2 %v3291_v0 }
  0x2b   : > { %458 = vperm.xlu0 %3209, %v439_v9   ;;  %586 = vperm.xlu2 %3212, %v442_v3  }
  0x2c   : > { %3211 = vset.pattern.permute.xlu1 %v3292_v1 }
  0x2d   : > { %534 = vperm.xlu1 %3211, %v434_v10  }
  0x33   : > { %3213 = vset.pattern.permute.xlu2 %v3292_v1  ;;  %519 = vperm.xlu0 %3209, %v431_v11  }
  0x34   : > { %529 = vperm.xlu2 %3213, %v433_v12  }
  0x35   : > { %463 = vperm.xlu1 %3211, %v440_v13  }
  0x3b   : > { %448 = vperm.xlu0 %3209, %v437_v14  }
  0x3c   : > { %3215 = vset.pattern.permute.xlu2 %v3293_v8 }
  0x3d   : > { %657 = vperm.xlu2 %3215, %v442_v3   ;;  %3214 = vset.pattern.permute.xlu1 %v3291_v0 }
  0x3e   : > { %582 = vperm.xlu1 %3214, %v441_v7  }
  0x43   : > { %3222 = vset.pattern.permute.xlu0 %v3293_v8 }
  0x44   : > { %661 = vperm.xlu0 %3222, %v443_v2  }
  0x45   : > { %3217 = vset.pattern.permute.xlu2 %v3291_v0 }
  0x46   : > { %578 = vperm.xlu2 %3217, %v440_v13   ;;  %3216 = vset.pattern.permute.xlu1 %v3292_v1 }
  0x47   : > { %524 = vperm.xlu1 %3216, %v432_v15  }
  0x4c   : > { %645 = vperm.xlu0 %3222, %v439_v9  }
  0x4e   : > { %3219 = vset.pattern.permute.xlu2 %v3292_v1 }
  0x4f   : > { %453 = vperm.xlu2 %3219, %v438_v16   ;;  %3218 = vset.pattern.permute.xlu1 %v3293_v8 }
  0x50   : > { %653 = vperm.xlu1 %3218, %v441_v7  }
  0x54   : > { %3227 = vset.pattern.permute.xlu0 %v3292_v1 }
  0x57   : > { %3221 = vset.pattern.permute.xlu2 %v3293_v8 }
  0x58   : > { %649 = vperm.xlu2 %3221, %v440_v13   ;;  %3220 = vset.pattern.permute.xlu1 %v3291_v0 }
  0x59   : > { %574 = vperm.xlu1 %3220, %v439_v9  }
  0x60   : > { %3224 = vset.pattern.permute.xlu2 %v3291_v0 }
  0x61   : > { %570 = vperm.xlu2 %3224, %v438_v16   ;;  %3223 = vset.pattern.permute.xlu1 %v3292_v1 }
  0x62   : > { %514 = vperm.xlu1 %3223, %v430_v17  }
  0x69   : > { %566 = vperm.xlu2 %3224, %v437_v14  }
  0x6a   : > { %509 = vperm.xlu1 %3223, %v429_v18  }
  0x6c   : > { %v474_v19 = vpop.permute.xlu2 %473 }
  0x6d   : > { %v501_v61 = vmul.f32 %v3422_v26, %v474_v19  ;;  %v502_v62 = vmul.f32 %v3424_v27, %v474_v19 }
  0x71   : > { %3226 = vset.pattern.permute.xlu2 %v3293_v8 }
  0x72   : > { %637 = vperm.xlu2 %3226, %v437_v14   ;;  %3225 = vset.pattern.permute.xlu1 %v3293_v8 }
  0x73   : > { %641 = vperm.xlu1 %3225, %v438_v16   ;;  %v749_v16 = vld [vmem:[%s3961_s4 + $0x60] sm:$0xff] }
  0x74   : > { %v540_v20 = vpop.permute.xlu2 %539 }
  0x7a   : > { %3229 = vset.pattern.permute.xlu2 %v3292_v1 }
  0x7b   : > { %3228 = vset.pattern.permute.xlu1 %v3292_v1 }
  0x7c   : > { %v3417_v23 = vpop.permute.xlu2 %468  ;;  %825 = vperm.xlu1 %3228, %v751_v60  }
  0x83   : > { %v591_v21 = vpop.permute.xlu0 %590 }
  0x84   : > { %v545_v22 = vpop.permute.xlu1 %544  ;;  %v614_v6 = vmul.f32 %v3428_v34, %v591_v21  ;;  %v615_v7 = vmul.f32 %v3430_v35, %v591_v21  ;;  %815 = vperm.xlu1 %3228, %v749_v16  }
  0x85   : > { %v587_v32 = vpop.permute.xlu2 %586 }
  0x86   : > { %v612_v1 = vmul.f32 %v3428_v34, %v587_v32  ;;  %v613_v2 = vmul.f32 %v3430_v35, %v587_v32 }
  0x8d   : > { %v484_v25 = vpop.permute.xlu0 %483  ;;  %v595_v28 = vpop.permute.xlu1 %594 }
  0x8e   : > { %v505_v30 = vmul.f32 %v3422_v26, %v484_v25  ;;  %v506_v31 = vmul.f32 %v3424_v27, %v484_v25  ;;  %v616_v41 = vmul.f32 %v3428_v34, %v595_v28  ;;  %v617_v42 = vmul.f32 %v3430_v35, %v595_v28  ;;  %v3440_v50 = vpop.permute.xlu2 %529 }
  0x90   : > { %v561_v36 = vadd.f32 %v545_v22, %v505_v30  ;;  %v562_v38 = vadd.f32 %v545_v22, %v506_v31 }
  0x92   : > { %v632_v44 = vadd.f32 %v616_v41, %v561_v36  ;;  %v633_v46 = vadd.f32 %v617_v42, %v562_v38 }
  0x95   : > { %v479_v40 = vpop.permute.xlu0 %478 }
  0x96   : > { %v666_v43 = vpop.permute.xlu1 %665  ;;  %v503_v63 = vmul.f32 %v3422_v26, %v479_v40  ;;  %v504_v0 = vmul.f32 %v3424_v27, %v479_v40 }
  0x97   : > { %v687_v45 = vmul.f32 %v3432_v37, %v666_v43  ;;  %v688_v47 = vmul.f32 %v3434_v39, %v666_v43  ;;  %v658_v55 = vpop.permute.xlu2 %657  ;;  %v752_v43 = vld [vmem:[%s3961_s4 + $0x78] sm:$0xff] }
  0x98   : > { %v559_v8 = vadd.f32 %v540_v20, %v503_v63  ;;  %v560_v9 = vadd.f32 %v540_v20, %v504_v0  ;;  %v683_v10 = vmul.f32 %v3432_v37, %v658_v55  ;;  %v684_v11 = vmul.f32 %v3434_v39, %v658_v55  ;;  %830 = vperm.xlu0 %3227, %v752_v43   ;;  %v738_v43 = vld [vmem:[%s3961_s4 + $0x8] sm:$0xff] }
  0x99   : > { %v703_v48 = vadd.f32 %v687_v45, %v632_v44  ;;  %v704_v49 = vadd.f32 %v688_v47, %v633_v46  ;;  %v746_v44 = vld [vmem:[%s3961_s4 + $0x48] sm:$0xff]  ;;  %v499_v45 = vmul.f32 %v3422_v26, %v3417_v23  ;;  %v500_v46 = vmul.f32 %v3424_v27, %v3417_v23 }
  0x9a   : > { %v630_v19 = vadd.f32 %v614_v6, %v559_v8  ;;  %v631_v21 = vadd.f32 %v615_v7, %v560_v9  ;;  %800 = vperm.xlu1 %3228, %v746_v44  }
  0x9b   : > { %v719_v51 = vmax.f32 %v703_v48, 0.0  ;;  %v720_v52 = vmax.f32 %v704_v49, 0.0 }
  0x9d   : > { %v3442_v53 = vpop.permute.xlu0 %458  ;;  %890 = vmatpush.msra.mxu0 %v719_v51  ;;  %955 = vmatpush.msra.mxu1 %v720_v52  ;;  %v555_v51 = vadd.f32 %v3440_v50, %v499_v45  ;;  %v556_v52 = vadd.f32 %v3440_v50, %v500_v46  ;;  %v747_v50 = vld [vmem:[%s3961_s4 + $0x50] sm:$0xff] }
  0x9e   : > { %v496_v6 = vmul.f32 %v3424_v27, %v3442_v53 }
  0x9f   : > { %v535_v54 = vpop.permute.xlu1 %534 }
  0xa0   : > { %v579_v58 = vpop.permute.xlu2 %578  ;;  %v557_v3 = vadd.f32 %v535_v54, %v501_v61  ;;  %v558_v4 = vadd.f32 %v535_v54, %v502_v62  ;;  %805 = vperm.xlu0 %3227, %v747_v50  }
  0xa1   : > { %v608_v38 = vmul.f32 %v3428_v34, %v579_v58  ;;  %v609_v40 = vmul.f32 %v3430_v35, %v579_v58 }
  0xa2   : > { %v628_v13 = vadd.f32 %v612_v1, %v557_v3  ;;  %v629_v14 = vadd.f32 %v613_v2, %v558_v4  ;;  %v743_v4 = vld [vmem:[%s3961_s4 + $0x30] sm:$0xff] }
  0xa3   : > { %785 = vperm.xlu1 %3228, %v743_v4   ;;  %v722_v4 = vld [vmem:[%s3960_s3 + $0x8] sm:$0xff] }
  0xa4   : > { %v699_v24 = vadd.f32 %v683_v10, %v628_v13  ;;  %v700_v25 = vadd.f32 %v684_v11, %v629_v14 }
  0xa5   : > { %v3444_v56 = vpop.permute.xlu0 %519 }
  0xa6   : > { %v715_v33 = vmax.f32 %v699_v24, 0.0  ;;  %v716_v36 = vmax.f32 %v700_v25, 0.0  ;;  %v552_v14 = vadd.f32 %v3444_v56, %v496_v6  ;;  %v723_v6 = vld [vmem:[%s3960_s3 + $0x10] sm:$0xff] }
  0xa7   : > { %v464_v57 = vpop.permute.xlu1 %463 }
  0xa8   : > { %v497_v31 = vmul.f32 %v3422_v26, %v464_v57  ;;  %v498_v32 = vmul.f32 %v3424_v27, %v464_v57 }
  0xa9   : > { %v3461_v12 = vpop.permute.xlu2 %453 }
  0xaa   : > { %v494_v44 = vmul.f32 %v3424_v27, %v3461_v12 }
  0xad   : > { %v3446_v59 = vpop.permute.xlu0 %448 }
  0xb0   : > { %v583_v5 = vpop.permute.xlu1 %582 }
  0xb1   : > { %v610_v48 = vmul.f32 %v3428_v34, %v583_v5  ;;  %v611_v49 = vmul.f32 %v3430_v35, %v583_v5  ;;  %v495_v5 = vmul.f32 %v3422_v26, %v3442_v53 }
  0xb2   : > { %v650_v47 = vpop.permute.xlu2 %649 }
  0xb3   : > { %v679_v54 = vmul.f32 %v3432_v37, %v650_v47  ;;  %v680_v55 = vmul.f32 %v3434_v39, %v650_v47  ;;  %v626_v62 = vadd.f32 %v610_v48, %v555_v51  ;;  %v627_v63 = vadd.f32 %v611_v49, %v556_v52 }
  0xb4   : > { %v551_v13 = vadd.f32 %v3444_v56, %v495_v5  ;;  %v740_v56 = vld [vmem:[%s3961_s4 + $0x18] sm:$0xff]  ;;  %v742_v5 = vld [vmem:[%s3961_s4 + $0x28] sm:$0xff] }
  0xb5   : > { %770 = vperm.xlu1 %3228, %v740_v56  }
  0xb6   : > { %v662_v15 = vpop.permute.xlu0 %661 }
  0xb7   : > { %v685_v17 = vmul.f32 %v3432_v37, %v662_v15  ;;  %v686_v18 = vmul.f32 %v3434_v39, %v662_v15 }
  0xb9   : > { %v701_v20 = vadd.f32 %v685_v17, %v630_v19  ;;  %v702_v22 = vadd.f32 %v686_v18, %v631_v21  ;;  %v525_v28 = vpop.permute.xlu1 %524 }
  0xba   : > { %v553_v41 = vadd.f32 %v525_v28, %v497_v31  ;;  %v554_v42 = vadd.f32 %v525_v28, %v498_v32  ;;  %v741_v32 = vld [vmem:[%s3961_s4 + $0x20] sm:$0xff] }
  0xbb   : > { %v717_v29 = vmax.f32 %v701_v20, 0.0  ;;  %v718_v30 = vmax.f32 %v702_v22, 0.0  ;;  %v571_v19 = vpop.permute.xlu2 %570  ;;  %v744_v22 = vld [vmem:[%s3961_s4 + $0x38] sm:$0xff] }
  0xbc   : > { %v624_v57 = vadd.f32 %v608_v38, %v553_v41  ;;  %v625_v58 = vadd.f32 %v609_v40, %v554_v42  ;;  %790 = vperm.xlu0 %3227, %v744_v22   ;;  %v491_v38 = vmul.f32 %v3422_v26, %v3446_v59  ;;  %v492_v40 = vmul.f32 %v3424_v27, %v3446_v59  ;;  %v750_v42 = vld [vmem:[%s3961_s4 + $0x68] sm:$0xff] }
  0xbd   : > { %891 = vmatpush.msra.mxu0 %v717_v29  ;;  %956 = vmatpush.msra.mxu1 %v718_v30  ;;  %v493_v41 = vmul.f32 %v3422_v26, %v3461_v12  ;;  %v604_v59 = vmul.f32 %v3428_v34, %v571_v19  ;;  %v605_v47 = vmul.f32 %v3430_v35, %v571_v19  ;;  %v735_v19 = vld [vmem:[%s3960_s3 + $0x70] sm:$0xff] }
  0xbe   : > { %v695_v2 = vadd.f32 %v679_v54, %v624_v57  ;;  %v696_v3 = vadd.f32 %v680_v55, %v625_v58  ;;  %v646_v11 = vpop.permute.xlu0 %645  ;;  %820 = vperm.xlu2 %3229, %v750_v42  }
  0xbf   : > { %892 = vmatpush.msra.mxu0 %v715_v33  ;;  %957 = vmatpush.msra.mxu1 %v716_v36  ;;  %v677_v17 = vmul.f32 %v3432_v37, %v646_v11  ;;  %v678_v18 = vmul.f32 %v3434_v39, %v646_v11  ;;  %v737_v33 = vld [vmem:[%s3961_s4] sm:$0xff]  ;;  %v727_v11 = vld [vmem:[%s3960_s3 + $0x30] sm:$0xff] }
  0xc0   : > { %v711_v9 = vmax.f32 %v695_v2, 0.0  ;;  %v712_v10 = vmax.f32 %v696_v3, 0.0  ;;  %755 = vperm.xlu1 %3228, %v737_v33  }
  0xc2   : > { %v654_v23 = vpop.permute.xlu1 %653 }
  0xc3   : > { %v681_v60 = vmul.f32 %v3432_v37, %v654_v23  ;;  %v682_v61 = vmul.f32 %v3434_v39, %v654_v23  ;;  %v567_v31 = vpop.permute.xlu2 %566 }
  0xc4   : > { %775 = vperm.xlu0 %3227, %v741_v32   ;;  %v602_v51 = vmul.f32 %v3428_v34, %v567_v31  ;;  %v603_v52 = vmul.f32 %v3430_v35, %v567_v31 }
  0xc5   : > { %v697_v0 = vadd.f32 %v681_v60, %v626_v62  ;;  %v698_v1 = vadd.f32 %v682_v61, %v627_v63  ;;  %v748_v62 = vld [vmem:[%s3961_s4 + $0x58] sm:$0xff] }
  0xc6   : > { %810 = vperm.xlu2 %3229, %v748_v62  }
  0xc7   : > { %v713_v7 = vmax.f32 %v697_v0, 0.0  ;;  %v714_v8 = vmax.f32 %v698_v1, 0.0 }
  0xc9   : > { %893 = vmatpush.msra.mxu0 %v713_v7  ;;  %958 = vmatpush.msra.mxu1 %v714_v8  ;;  %v739_v7 = vld [vmem:[%s3961_s4 + $0x10] sm:$0xff]  ;;  %v724_v8 = vld [vmem:[%s3960_s3 + $0x18] sm:$0xff] }
  0xcb   : > { %v575_v15 = vpop.permute.xlu1 %574  ;;  %894 = vmatpush.msra.mxu0 %v711_v9  ;;  %959 = vmatpush.msra.mxu1 %v712_v10  ;;  %v725_v9 = vld [vmem:[%s3960_s3 + $0x20] sm:$0xff]  ;;  %v726_v10 = vld [vmem:[%s3960_s3 + $0x28] sm:$0xff] }
  0xcc   : > { %v606_v16 = vmul.f32 %v3428_v34, %v575_v15  ;;  %v607_v53 = vmul.f32 %v3430_v35, %v575_v15  ;;  %760 = vperm.xlu0 %3227, %v738_v43   ;;  %v638_v26 = vpop.permute.xlu2 %637  ;;  %v730_v15 = vld [vmem:[%s3960_s3 + $0x48] sm:$0xff] }
  0xcd   : > { %v673_v54 = vmul.f32 %v3432_v37, %v638_v26  ;;  %v674_v55 = vmul.f32 %v3434_v39, %v638_v26 }
  0xce   : > { %v622_v21 = vadd.f32 %v606_v16, %v551_v13  ;;  %v623_v20 = vadd.f32 %v607_v53, %v552_v14  ;;  %v728_v13 = vld [vmem:[%s3960_s3 + $0x38] sm:$0xff]  ;;  %v729_v14 = vld [vmem:[%s3960_s3 + $0x40] sm:$0xff]  ;;  %v731_v16 = vld [vmem:[%s3960_s3 + $0x50] sm:$0xff] }
  0xcf   : > { %v732_v53 = vld [vmem:[%s3960_s3 + $0x58] sm:$0xff] }
  0xd0   : > { %v693_v24 = vadd.f32 %v677_v17, %v622_v21  ;;  %v694_v25 = vadd.f32 %v678_v18, %v623_v20  ;;  %v733_v17 = vld [vmem:[%s3960_s3 + $0x60] sm:$0xff]  ;;  %v734_v18 = vld [vmem:[%s3960_s3 + $0x68] sm:$0xff]  ;;  %v736_v21 = vld [vmem:[%s3960_s3 + $0x78] sm:$0xff] }
  0xd2   : > { %v709_v28 = vmax.f32 %v693_v24, 0.0  ;;  %v710_v29 = vmax.f32 %v694_v25, 0.0 }
  0xd4   : > { %895 = vmatpush.msra.mxu0 %v709_v28  ;;  %960 = vmatpush.msra.mxu1 %v710_v29  ;;  %v515_v30 = vpop.permute.xlu1 %514 }
  0xd5   : > { %v549_v48 = vadd.f32 %v515_v30, %v493_v41  ;;  %v550_v49 = vadd.f32 %v515_v30, %v494_v44 }
  0xd7   : > { %v620_v60 = vadd.f32 %v604_v59, %v549_v48  ;;  %v621_v61 = vadd.f32 %v605_v47, %v550_v49 }
  0xdc   : > { %v510_v36 = vpop.permute.xlu1 %509 }
  0xdd   : > { %v547_v45 = vadd.f32 %v510_v36, %v491_v38  ;;  %v548_v46 = vadd.f32 %v510_v36, %v492_v40 }
  0xdf   : > { %v618_v27 = vadd.f32 %v602_v51, %v547_v45  ;;  %v619_v12 = vadd.f32 %v603_v52, %v548_v46 }
  0xe1   : > { %v689_v35 = vadd.f32 %v673_v54, %v618_v27  ;;  %v690_v0 = vadd.f32 %v674_v55, %v619_v12 }
  0xe3   : > { %v705_v3 = vmax.f32 %v689_v35, 0.0  ;;  %v706_v50 = vmax.f32 %v690_v0, 0.0 }
  0xe5   : > { %v642_v57 = vpop.permute.xlu1 %641 }
  0xe6   : > { %v675_v58 = vmul.f32 %v3432_v37, %v642_v57  ;;  %v676_v23 = vmul.f32 %v3434_v39, %v642_v57  ;;  %v721_v37 = vld [vmem:[%s3960_s3] sm:$0xff] }
  0xe7   : > { %v745_v39 = vld [vmem:[%s3961_s4 + $0x40] sm:$0xff] }
  0xe8   : > { %v691_v34 = vadd.f32 %v675_v58, %v620_v60  ;;  %v692_v63 = vadd.f32 %v676_v23, %v621_v61  ;;  %795 = vperm.xlu2 %3229, %v745_v39  }
  0xea   : > { %v707_v1 = vmax.f32 %v691_v34, 0.0  ;;  %v708_v2 = vmax.f32 %v692_v63, 0.0 }
  0xec   : > { %896 = vmatpush.msra.mxu0 %v707_v1  ;;  %961 = vmatpush.msra.mxu1 %v708_v2 }
  0xee   : > { %897 = vmatpush.msra.mxu0 %v705_v3  ;;  %962 = vmatpush.msra.mxu1 %v706_v50  ;;  %v826_v49 = vpop.permute.xlu1 %825 }
  0xef   : > { %3097 = vmatmul.msk.f32.vlgmr.msra.gmra.mxu0 %vm833_vm0, %v721_v37  ;;  %3113 = vmatmul.msk.f32.vlgmr.msra.gmra.mxu1 %vm833_vm0, %v721_v37 }
  0xf0   : > { %780 = vperm.xlu2 %3229, %v742_v5  }
  0xf6   : > { %v816_v57 = vpop.permute.xlu1 %815 }
  0xf7   : > { %3098 = vmatmul.msk.f32.gmra.mxu0 %vm833_vm0, %v722_v4  ;;  %3114 = vmatmul.msk.f32.gmra.mxu1 %vm833_vm0, %v722_v4 }
  0xf8   : > { %765 = vperm.xlu2 %3229, %v739_v7  }
  0xff   : > { %3099 = vmatmul.msk.f32.gmra.mxu0 %vm833_vm0, %v723_v6  ;;  %3115 = vmatmul.msk.f32.gmra.mxu1 %vm833_vm0, %v723_v6 }
 0x107   : > { %3100 = vmatmul.msk.f32.gmra.mxu0 %vm833_vm0, %v724_v8  ;;  %3116 = vmatmul.msk.f32.gmra.mxu1 %vm833_vm0, %v724_v8 }
 0x10a   : > { %v831_v55 = vpop.permute.xlu0 %830 }
 0x10c   : > { %v801_v62 = vpop.permute.xlu1 %800 }
 0x10f   : > { %3101 = vmatmul.msk.f32.gmra.mxu0 %vm833_vm0, %v725_v9  ;;  %3117 = vmatmul.msk.f32.gmra.mxu1 %vm833_vm0, %v725_v9 }
 0x112   : > { %v806_v61 = vpop.permute.xlu0 %805 }
 0x115   : > { %v786_v8 = vpop.permute.xlu1 %785 }
 0x117   : > { %3102 = vmatmul.msk.f32.gmra.mxu0 %vm833_vm0, %v726_v10  ;;  %3118 = vmatmul.msk.f32.gmra.mxu1 %vm833_vm0, %v726_v10 }
 0x118   : > { %v821_v54 = vpop.permute.xlu2 %820 }
 0x11f   : > { %3103 = vmatmul.msk.f32.gmra.mxu0 %vm833_vm0, %v727_v11  ;;  %3119 = vmatmul.msk.f32.gmra.mxu1 %vm833_vm0, %v727_v11 }
 0x120   : > { %v811_v58 = vpop.permute.xlu2 %810 }
 0x127   : > { %3104 = vmatmul.msk.f32.gmra.mxu0 %vm833_vm0, %v728_v13  ;;  %3120 = vmatmul.msk.f32.gmra.mxu1 %vm833_vm0, %v728_v13 }
 0x12e   : > { %v791_v4 = vpop.permute.xlu0 %790 }
 0x12f   : > { %3105 = vmatmul.msk.f32.gmra.mxu0 %vm833_vm0, %v729_v14  ;;  %3121 = vmatmul.msk.f32.gmra.mxu1 %vm833_vm0, %v729_v14 }
 0x137   : > { %3106 = vmatmul.msk.f32.gmra.mxu0 %vm833_vm0, %v730_v15  ;;  %3122 = vmatmul.msk.f32.gmra.mxu1 %vm833_vm0, %v730_v15 }
 0x13f   : > { %3107 = vmatmul.msk.f32.gmra.mxu0 %vm833_vm0, %v731_v16  ;;  %3123 = vmatmul.msk.f32.gmra.mxu1 %vm833_vm0, %v731_v16 }
 0x142   : > { %v796_v2 = vpop.permute.xlu2 %795 }
 0x147   : > { %3108 = vmatmul.msk.f32.gmra.mxu0 %vm833_vm0, %v732_v53  ;;  %3124 = vmatmul.msk.f32.gmra.mxu1 %vm833_vm0, %v732_v53 }
 0x14f   : > { %3109 = vmatmul.msk.f32.gmra.mxu0 %vm833_vm0, %v733_v17  ;;  %3125 = vmatmul.msk.f32.gmra.mxu1 %vm833_vm0, %v733_v17 }
 0x157   : > { %3110 = vmatmul.msk.f32.gmra.mxu0 %vm833_vm0, %v734_v18  ;;  %3126 = vmatmul.msk.f32.gmra.mxu1 %vm833_vm0, %v734_v18 }
 0x15f   : > { %3111 = vmatmul.msk.f32.gmra.mxu0 %vm833_vm0, %v735_v19  ;;  %3127 = vmatmul.msk.f32.gmra.mxu1 %vm833_vm0, %v735_v19 }
 0x167   : > { %3112 = vmatmul.msk.f32.gmra.mxu0 %vm833_vm0, %v736_v21  ;;  %3128 = vmatmul.msk.f32.gmra.mxu1 %vm833_vm0, %v736_v21 }
 0x16c   : > { %v3632_v20 = vpop.f32.mrf.mxu0  ;;  %v3634_v22 = vpop.f32.mrf.mxu1 }
 0x174   : > { %v3636_v56 = vpop.f32.mrf.mxu0  ;;  %v3638_v24 = vpop.f32.mrf.mxu1 }
 0x17c   : > { %v3640_v25 = vpop.f32.mrf.mxu0  ;;  %v3642_v28 = vpop.f32.mrf.mxu1 }
 0x184   : > { %v3644_v29 = vpop.f32.mrf.mxu0  ;;  %v3646_v30 = vpop.f32.mrf.mxu1 }
 0x18c   : > { %v3648_v31 = vpop.f32.mrf.mxu0  ;;  %v3650_v32 = vpop.f32.mrf.mxu1 }
 0x194   : > { %v3652_v33 = vpop.f32.mrf.mxu0  ;;  %v3654_v36 = vpop.f32.mrf.mxu1 }
 0x19c   : > { %v3656_v38 = vpop.f32.mrf.mxu0  ;;  %v3658_v40 = vpop.f32.mrf.mxu1 }
 0x1a4   : > { %v3660_v41 = vpop.f32.mrf.mxu0  ;;  %v3662_v42 = vpop.f32.mrf.mxu1 }
 0x1ac   : > { %v3664_v43 = vpop.f32.mrf.mxu0  ;;  %v3666_v44 = vpop.f32.mrf.mxu1 }
 0x1b4   : > { %v926_v45 = vpop.f32.mrf.mxu0  ;;  %v991_v46 = vpop.f32.mrf.mxu1 }
 0x1b5   : > { %v927_v19 = vadd.f32 %v926_v45, %v801_v62  ;;  %v921_v45 = vadd.f32 %v3660_v41, %v791_v4 }
 0x1bc   : > { %v929_v59 = vpop.f32.mrf.mxu0  ;;  %v994_v47 = vpop.f32.mrf.mxu1 }
 0x1bd   : > { %v930_v16 = vadd.f32 %v929_v59, %v806_v61  ;;  %v995_v17 = vadd.f32 %v994_v47, %v806_v61  ;;  %v989_v47 = vadd.f32 %v3666_v44, %v796_v2  ;;  %v983_v44 = vadd.f32 %v3658_v40, %v786_v8 }
 0x1bf   : > { %v1032_v59 = vmax.f32 %v930_v16, 0.0  ;;  %v1049_v16 = vld [vmem:[#allocation3 + $0x28] sm:$0xff] }
 0x1c4   : > { %v932_v26 = vpop.f32.mrf.mxu0  ;;  %v997_v48 = vpop.f32.mrf.mxu1 }
 0x1c5   : > { %v933_v11 = vadd.f32 %v932_v26, %v811_v58  ;;  %v998_v14 = vadd.f32 %v997_v48, %v811_v58  ;;  %v781_v26 = vpop.permute.xlu2 %780  ;;  %v1029_v58 = vmax.f32 %v989_v47, 0.0  ;;  %v1055_v47 = vld [vmem:[#allocation3 + $0x58] sm:$0xff] }
 0x1c6   : > { %v915_v41 = vadd.f32 %v3652_v33, %v781_v26 }
 0x1c7   : > { %v1034_v21 = vmax.f32 %v933_v11, 0.0  ;;  %v1035_v48 = vmax.f32 %v998_v14, 0.0  ;;  %v1047_v11 = vld [vmem:[#allocation3 + $0x18] sm:$0xff]  ;;  %v1048_v14 = vld [vmem:[#allocation3 + $0x20] sm:$0xff] }
 0x1cc   : > { %v935_v51 = vpop.f32.mrf.mxu0  ;;  %v1000_v52 = vpop.f32.mrf.mxu1 }
 0x1cd   : > { %v936_v6 = vadd.f32 %v935_v51, %v816_v57  ;;  %v1001_v9 = vadd.f32 %v1000_v52, %v816_v57  ;;  %v924_v51 = vadd.f32 %v3664_v43, %v796_v2  ;;  %v776_v52 = vpop.permute.xlu0 %775 }
 0x1ce   : > { %v977_v40 = vadd.f32 %v3650_v32, %v776_v52 }
 0x1cf   : > { %v1036_v53 = vmax.f32 %v936_v6, 0.0  ;;  %v1037_v18 = vmax.f32 %v1001_v9, 0.0  ;;  %v1028_v57 = vmax.f32 %v924_v51, 0.0  ;;  %v1044_v6 = vld [vmem:[#allocation3] sm:$0xff]  ;;  %v1046_v9 = vld [vmem:[#allocation3 + $0x10] sm:$0xff] }
 0x1d0   : > { %v1110_v51 = vld [vmem:[#allocation3 + $0x210] sm:$0xff] }
 0x1d4   : > { %v938_v27 = vpop.f32.mrf.mxu0  ;;  %v1003_v12 = vpop.f32.mrf.mxu1 }
 0x1d5   : > { %v939_v50 = vadd.f32 %v938_v27, %v821_v54  ;;  %v1004_v5 = vadd.f32 %v1003_v12, %v821_v54  ;;  %v1033_v54 = vmax.f32 %v995_v17, 0.0  ;;  %v986_v27 = vadd.f32 %v3662_v42, %v791_v4  ;;  %v1050_v17 = vld [vmem:[#allocation3 + $0x30] sm:$0xff] }
 0x1d6   : > { %v918_v12 = vadd.f32 %v3656_v38, %v786_v8  ;;  %v980_v42 = vadd.f32 %v3654_v36, %v781_v26  ;;  %v912_v38 = vadd.f32 %v3648_v31, %v776_v52  ;;  %v761_v36 = vpop.permute.xlu0 %760  ;;  %v1102_v8 = vld [vmem:[#allocation3 + $0x1d0] sm:$0xff]  ;;  %v1052_v26 = vld [vmem:[#allocation3 + $0x40] sm:$0xff]  ;;  %v1111_v52 = vld [vmem:[#allocation3 + $0x218] sm:$0xff] }
 0x1d7   : > { %v1038_v13 = vmax.f32 %v939_v50, 0.0  ;;  %v1039_v15 = vmax.f32 %v1004_v5, 0.0 }
 0x1d8   : > { %v1024_v61 = vmax.f32 %v918_v12, 0.0  ;;  %v1023_v31 = vmax.f32 %v980_v42, 0.0  ;;  %v1115_v12 = vld [vmem:[#allocation3 + $0x238] sm:$0xff]  ;;  %v1117_v42 = vld [vmem:[#allocation3 + $0x248] sm:$0xff] }
 0x1dc   : > { %v941_v23 = vpop.f32.mrf.mxu0  ;;  %v1006_v60 = vpop.f32.mrf.mxu1 }
 0x1dd   : > { %v942_v35 = vadd.f32 %v941_v23, %v826_v49  ;;  %v1007_v3 = vadd.f32 %v1006_v60, %v826_v49  ;;  %v992_v49 = vadd.f32 %v991_v46, %v801_v62  ;;  %v771_v46 = vpop.permute.xlu1 %770  ;;  %v1026_v23 = vmax.f32 %v921_v45, 0.0  ;;  %v766_v62 = vpop.permute.xlu2 %765  ;;  %v1056_v45 = vld [vmem:[#allocation3 + $0x60] sm:$0xff] }
 0x1de   : > { %v1027_v60 = vmax.f32 %v986_v27, 0.0  ;;  %v909_v33 = vadd.f32 %v3644_v29, %v771_v46  ;;  %v971_v2 = vadd.f32 %v3642_v28, %v766_v62  ;;  %v1021_v29 = vmax.f32 %v977_v40, 0.0  ;;  %v1114_v27 = vld [vmem:[#allocation3 + $0x230] sm:$0xff] }
 0x1df   : > { %v1040_v7 = vmax.f32 %v942_v35, 0.0  ;;  %v1041_v10 = vmax.f32 %v1007_v3, 0.0  ;;  %v1031_v43 = vmax.f32 %v992_v49, 0.0  ;;  %v974_v35 = vadd.f32 %v3646_v30, %v771_v46  ;;  %v1109_v49 = vld [vmem:[#allocation3 + $0x208] sm:$0xff] }
 0x1e0   : > { %v903_v3 = vadd.f32 %v3636_v56, %v761_v36  ;;  %v1018_v50 = vmax.f32 %v909_v33, 0.0  ;;  %v968_v30 = vadd.f32 %v3638_v24, %v761_v36  ;;  %v1017_v4 = vmax.f32 %v971_v2, 0.0  ;;  %v1057_v46 = vld [vmem:[#allocation3 + $0x68] sm:$0xff] }
 0x1e2   : > { %v1014_v56 = vmax.f32 %v903_v3, 0.0  ;;  %v1015_v5 = vmax.f32 %v968_v30, 0.0 }
 0x1e4   : > { %v944_v34 = vpop.f32.mrf.mxu0  ;;  %v1009_v63 = vpop.f32.mrf.mxu1 }
 0x1e5   : > { %v945_v0 = vadd.f32 %v944_v34, %v831_v55  ;;  %v1010_v1 = vadd.f32 %v1009_v63, %v831_v55  ;;  %v1030_v55 = vmax.f32 %v927_v19, 0.0  ;;  %v1025_v34 = vmax.f32 %v983_v44, 0.0  ;;  %v756_v32 = vpop.permute.xlu1 %755  ;;  %v1051_v19 = vld [vmem:[#allocation3 + $0x38] sm:$0xff]  ;;  %v1116_v44 = vld [vmem:[#allocation3 + $0x240] sm:$0xff] }
 0x1e6   : > { %v1022_v63 = vmax.f32 %v915_v41, 0.0  ;;  %v965_v28 = vadd.f32 %v3634_v22, %v756_v32  ;;  %v1045_v22 = vld [vmem:[#allocation3 + $0x8] sm:$0xff] }
 0x1e7   : > { %v1042_v37 = vmax.f32 %v945_v0, 0.0  ;;  %v1043_v39 = vmax.f32 %v1010_v1, 0.0  ;;  %v906_v0 = vadd.f32 %v3640_v25, %v766_v62  ;;  %v1020_v1 = vmax.f32 %v912_v38, 0.0 }
 0x1e8   : > { %v900_v25 = vadd.f32 %v3632_v20, %v756_v32  ;;  %v1013_v20 = vmax.f32 %v965_v28, 0.0  ;;  %v1062_v32 = vld [vmem:[#allocation3 + $0x90] sm:$0xff] }
 0x1e9   : > { %1172 = vmatpush.msrb.mxu0 %v1042_v37  ;;  %3133 = vmatpush.msra.mxu2 %v1042_v37  ;;  %v1019_v37 = vmax.f32 %v974_v35, 0.0 }
 0x1ea   : > { %1573 = vmatpush.msrb.mxu1 %v1043_v39  ;;  %3149 = vmatpush.msra.mxu3 %v1043_v39  ;;  %v1016_v39 = vmax.f32 %v906_v0, 0.0  ;;  %v1012_v24 = vmax.f32 %v900_v25, 0.0 }
 0x1eb   : > { %1173 = vmatpush.msrb.mxu0 %v1040_v7  ;;  %3134 = vmatpush.msra.mxu2 %v1040_v7  ;;  %v1101_v7 = vld [vmem:[#allocation3 + $0x1c8] sm:$0xff] }
 0x1ec   : > { %1574 = vmatpush.msrb.mxu1 %v1041_v10  ;;  %3150 = vmatpush.msra.mxu3 %v1041_v10  ;;  %v1103_v10 = vld [vmem:[#allocation3 + $0x1d8] sm:$0xff] }
 0x1ed   : > { %1174 = vmatpush.msrb.mxu0 %v1038_v13  ;;  %3135 = vmatpush.msra.mxu2 %v1038_v13  ;;  %v1104_v13 = vld [vmem:[#allocation3 + $0x1e0] sm:$0xff] }
 0x1ee   : > { %1575 = vmatpush.msrb.mxu1 %v1039_v15  ;;  %3151 = vmatpush.msra.mxu3 %v1039_v15  ;;  %v1105_v15 = vld [vmem:[#allocation3 + $0x1e8] sm:$0xff] }
 0x1ef   : > { %1175 = vmatpush.msrb.mxu0 %v1036_v53  ;;  %3136 = vmatpush.msra.mxu2 %v1036_v53  ;;  %v1106_v53 = vld [vmem:[#allocation3 + $0x1f0] sm:$0xff] }
 0x1f0   : > { %1576 = vmatpush.msrb.mxu1 %v1037_v18  ;;  %3152 = vmatpush.msra.mxu3 %v1037_v18  ;;  %v1107_v18 = vld [vmem:[#allocation3 + $0x1f8] sm:$0xff] }
 0x1f1   : > { %1176 = vmatpush.msrb.mxu0 %v1034_v21  ;;  %3137 = vmatpush.msra.mxu2 %v1034_v21  ;;  %v1108_v21 = vld [vmem:[#allocation3 + $0x200] sm:$0xff] }
 0x1f2   : > { %1577 = vmatpush.msrb.mxu1 %v1035_v48  ;;  %3153 = vmatpush.msra.mxu3 %v1035_v48  ;;  %v1053_v48 = vld [vmem:[#allocation3 + $0x48] sm:$0xff] }
 0x1f3   : > { %1177 = vmatpush.msrb.mxu0 %v1032_v59  ;;  %3138 = vmatpush.msra.mxu2 %v1032_v59  ;;  %v1054_v59 = vld [vmem:[#allocation3 + $0x50] sm:$0xff] }
 0x1f4   : > { %1578 = vmatpush.msrb.mxu1 %v1033_v54  ;;  %3154 = vmatpush.msra.mxu3 %v1033_v54  ;;  %v1112_v54 = vld [vmem:[#allocation3 + $0x220] sm:$0xff] }
 0x1f5   : > { %1178 = vmatpush.msrb.mxu0 %v1030_v55  ;;  %3139 = vmatpush.msra.mxu2 %v1030_v55  ;;  %v1113_v55 = vld [vmem:[#allocation3 + $0x228] sm:$0xff] }
 0x1f6   : > { %1579 = vmatpush.msrb.mxu1 %v1031_v43  ;;  %3155 = vmatpush.msra.mxu3 %v1031_v43  ;;  %v1058_v43 = vld [vmem:[#allocation3 + $0x70] sm:$0xff] }
 0x1f7   : > { %1179 = vmatpush.msrb.mxu0 %v1028_v57  ;;  %3140 = vmatpush.msra.mxu2 %v1028_v57  ;;  %v1059_v57 = vld [vmem:[#allocation3 + $0x78] sm:$0xff] }
 0x1f8   : > { %1580 = vmatpush.msrb.mxu1 %v1029_v58  ;;  %3156 = vmatpush.msra.mxu3 %v1029_v58 }
 0x1f9   : > { %1180 = vmatpush.msrb.mxu0 %v1026_v23  ;;  %3141 = vmatpush.msra.mxu2 %v1026_v23  ;;  %v1060_v23 = vld [vmem:[#allocation3 + $0x80] sm:$0xff] }
 0x1fa   : > { %1581 = vmatpush.msrb.mxu1 %v1027_v60  ;;  %3157 = vmatpush.msra.mxu3 %v1027_v60 }
 0x1fb   : > { %1181 = vmatpush.msrb.mxu0 %v1024_v61  ;;  %3142 = vmatpush.msra.mxu2 %v1024_v61 }
 0x1fc   : > { %1582 = vmatpush.msrb.mxu1 %v1025_v34  ;;  %3158 = vmatpush.msra.mxu3 %v1025_v34  ;;  %v1061_v34 = vld [vmem:[#allocation3 + $0x88] sm:$0xff] }
 0x1fd   : > { %1182 = vmatpush.msrb.mxu0 %v1022_v63  ;;  %3143 = vmatpush.msra.mxu2 %v1022_v63  ;;  %v1118_v63 = vld [vmem:[#allocation3 + $0x250] sm:$0xff] }
 0x1fe   : > { %1583 = vmatpush.msrb.mxu1 %v1023_v31  ;;  %3159 = vmatpush.msra.mxu3 %v1023_v31 }
 0x1ff   : > { %1183 = vmatpush.msrb.mxu0 %v1020_v1  ;;  %3144 = vmatpush.msra.mxu2 %v1020_v1 }
 0x200   : > { %1584 = vmatpush.msrb.mxu1 %v1021_v29  ;;  %3160 = vmatpush.msra.mxu3 %v1021_v29  ;;  %v1119_v29 = vld [vmem:[#allocation3 + $0x258] sm:$0xff] }
 0x201   : > { %1184 = vmatpush.msrb.mxu0 %v1018_v50  ;;  %3145 = vmatpush.msra.mxu2 %v1018_v50 }
 0x202   : > { %1585 = vmatpush.msrb.mxu1 %v1019_v37  ;;  %3161 = vmatpush.msra.mxu3 %v1019_v37 }
 0x203   : > { %1185 = vmatpush.msrb.mxu0 %v1016_v39  ;;  %3146 = vmatpush.msra.mxu2 %v1016_v39  ;;  %v1063_v39 = vld [vmem:[#allocation3 + $0x98] sm:$0xff] }
 0x204   : > { %1586 = vmatpush.msrb.mxu1 %v1017_v4  ;;  %3162 = vmatpush.msra.mxu3 %v1017_v4 }
 0x205   : > { %1186 = vmatpush.msrb.mxu0 %v1014_v56  ;;  %3147 = vmatpush.msra.mxu2 %v1014_v56  ;;  %v1120_v56 = vld [vmem:[#allocation3 + $0x260] sm:$0xff] }
 0x206   : > { %1587 = vmatpush.msrb.mxu1 %v1015_v5  ;;  %3163 = vmatpush.msra.mxu3 %v1015_v5 }
 0x207   : > { %1187 = vmatpush.msrb.mxu0 %v1012_v24  ;;  %3148 = vmatpush.msra.mxu2 %v1012_v24 }
 0x208   : > { %1588 = vmatpush.msrb.mxu1 %v1013_v20  ;;  %3164 = vmatpush.msra.mxu3 %v1013_v20 }
 0x209   : > { %1188 = vmatmul.f32.vlgmr.msrb.gmra.mxu0 %v1044_v6  ;;  %1589 = vmatmul.f32.vlgmr.msrb.gmra.mxu1 %v1044_v6 }
 0x20a   : > { %1359 = vmatmul.f32.vlgmr.msra.gmra.mxu2 %v1101_v7  ;;  %1760 = vmatmul.f32.vlgmr.msra.gmra.mxu3 %v1101_v7  ;;  %v1064_v7 = vld [vmem:[#allocation3 + $0xa0] sm:$0xff] }
 0x211   : > { %1191 = vmatmul.f32.gmra.mxu0 %v1045_v22  ;;  %1592 = vmatmul.f32.gmra.mxu1 %v1045_v22 }
 0x212   : > { %1362 = vmatmul.f32.gmra.mxu2 %v1102_v8  ;;  %1763 = vmatmul.f32.gmra.mxu3 %v1102_v8 }
 0x219   : > { %1194 = vmatmul.f32.gmra.mxu0 %v1046_v9  ;;  %1595 = vmatmul.f32.gmra.mxu1 %v1046_v9  ;;  %v1121_v9 = vld [vmem:[#allocation3 + $0x268] sm:$0xff] }
 0x21a   : > { %1365 = vmatmul.f32.gmra.mxu2 %v1103_v10  ;;  %1766 = vmatmul.f32.gmra.mxu3 %v1103_v10 }
 0x221   : > { %1197 = vmatmul.f32.gmra.mxu0 %v1047_v11  ;;  %1598 = vmatmul.f32.gmra.mxu1 %v1047_v11 }
 0x222   : > { %1368 = vmatmul.f32.gmra.mxu2 %v1104_v13  ;;  %1769 = vmatmul.f32.gmra.mxu3 %v1104_v13 }
 0x229   : > { %1200 = vmatmul.f32.gmra.mxu0 %v1048_v14  ;;  %1601 = vmatmul.f32.gmra.mxu1 %v1048_v14 }
 0x22a   : > { %1371 = vmatmul.f32.gmra.mxu2 %v1105_v15  ;;  %1772 = vmatmul.f32.gmra.mxu3 %v1105_v15  ;;  %v1065_v15 = vld [vmem:[#allocation3 + $0xa8] sm:$0xff] }
 0x231   : > { %1203 = vmatmul.f32.gmra.mxu0 %v1049_v16  ;;  %1604 = vmatmul.f32.gmra.mxu1 %v1049_v16 }
 0x232   : > { %1374 = vmatmul.f32.gmra.mxu2 %v1106_v53  ;;  %1775 = vmatmul.f32.gmra.mxu3 %v1106_v53 }
 0x239   : > { %1206 = vmatmul.f32.gmra.mxu0 %v1050_v17  ;;  %1607 = vmatmul.f32.gmra.mxu1 %v1050_v17  ;;  %v1122_v17 = vld [vmem:[#allocation3 + $0x270] sm:$0xff] }
 0x23a   : > { %1377 = vmatmul.f32.gmra.mxu2 %v1107_v18  ;;  %1778 = vmatmul.f32.gmra.mxu3 %v1107_v18 }
 0x241   : > { %1209 = vmatmul.f32.gmra.mxu0 %v1051_v19  ;;  %1610 = vmatmul.f32.gmra.mxu1 %v1051_v19 }
 0x242   : > { %1380 = vmatmul.f32.gmra.mxu2 %v1108_v21  ;;  %1781 = vmatmul.f32.gmra.mxu3 %v1108_v21 }
 0x249   : > { %1212 = vmatmul.f32.gmra.mxu0 %v1052_v26  ;;  %1613 = vmatmul.f32.gmra.mxu1 %v1052_v26 }
 0x24a   : > { %1383 = vmatmul.f32.gmra.mxu2 %v1109_v49  ;;  %1784 = vmatmul.f32.gmra.mxu3 %v1109_v49  ;;  %v1066_v49 = vld [vmem:[#allocation3 + $0xb0] sm:$0xff] }
 0x251   : > { %1215 = vmatmul.f32.gmra.mxu0 %v1053_v48  ;;  %1616 = vmatmul.f32.gmra.mxu1 %v1053_v48 }
 0x252   : > { %1386 = vmatmul.f32.gmra.mxu2 %v1110_v51  ;;  %1787 = vmatmul.f32.gmra.mxu3 %v1110_v51 }
 0x259   : > { %1218 = vmatmul.f32.gmra.mxu0 %v1054_v59  ;;  %1619 = vmatmul.f32.gmra.mxu1 %v1054_v59  ;;  %v1123_v59 = vld [vmem:[#allocation3 + $0x278] sm:$0xff] }
 0x25a   : > { %1389 = vmatmul.f32.gmra.mxu2 %v1111_v52  ;;  %1790 = vmatmul.f32.gmra.mxu3 %v1111_v52 }
 0x261   : > { %1221 = vmatmul.f32.gmra.mxu0 %v1055_v47  ;;  %1622 = vmatmul.f32.gmra.mxu1 %v1055_v47 }
 0x262   : > { %1392 = vmatmul.f32.gmra.mxu2 %v1112_v54  ;;  %1793 = vmatmul.f32.gmra.mxu3 %v1112_v54 }
 0x269   : > { %1224 = vmatmul.f32.gmra.mxu0 %v1056_v45  ;;  %1625 = vmatmul.f32.gmra.mxu1 %v1056_v45 }
 0x26a   : > { %1395 = vmatmul.f32.gmra.mxu2 %v1113_v55  ;;  %1796 = vmatmul.f32.gmra.mxu3 %v1113_v55  ;;  %v1067_v55 = vld [vmem:[#allocation3 + $0xb8] sm:$0xff] }
 0x271   : > { %1227 = vmatmul.f32.gmra.mxu0 %v1057_v46  ;;  %1628 = vmatmul.f32.gmra.mxu1 %v1057_v46 }
 0x272   : > { %1398 = vmatmul.f32.gmra.mxu2 %v1114_v27  ;;  %1799 = vmatmul.f32.gmra.mxu3 %v1114_v27 }
 0x279   : > { %1230 = vmatmul.f32.gmra.mxu0 %v1058_v43  ;;  %1631 = vmatmul.f32.gmra.mxu1 %v1058_v43  ;;  %v1124_v43 = vld [vmem:[#allocation3 + $0x280] sm:$0xff] }
 0x27a   : > { %1401 = vmatmul.f32.gmra.mxu2 %v1115_v12  ;;  %1802 = vmatmul.f32.gmra.mxu3 %v1115_v12 }
 0x281   : > { %1233 = vmatmul.f32.gmra.mxu0 %v1059_v57  ;;  %1634 = vmatmul.f32.gmra.mxu1 %v1059_v57 }
 0x282   : > { %1404 = vmatmul.f32.gmra.mxu2 %v1116_v44  ;;  %1805 = vmatmul.f32.gmra.mxu3 %v1116_v44 }
 0x286   : > { %v1189_v58 = vpop.f32.mrf.mxu0  ;;  %v1590_v41 = vpop.f32.mrf.mxu1 }
 0x287   : > { %v2230_v60 = vmax.f32 %v1189_v58, %v1590_v41  ;;  %v1068_v41 = vld [vmem:[#allocation3 + $0xc0] sm:$0xff] }
 0x289   : > { %1236 = vmatmul.f32.gmra.mxu0 %v1060_v23  ;;  %1637 = vmatmul.f32.gmra.mxu1 %v1060_v23 }
 0x28a   : > { %1407 = vmatmul.f32.gmra.mxu2 %v1117_v42  ;;  %1808 = vmatmul.f32.gmra.mxu3 %v1117_v42 }
 0x28b   : > { %2617 = vmax.xlane.f32.xlu2 %v2230_v60  ;;  %v1125_v60 = vld [vmem:[#allocation3 + $0x288] sm:$0xff] }
 0x28d   : > { %v1360_v38 = vpop.f32.mrf.mxu2  ;;  %v1761_v61 = vpop.f32.mrf.mxu3 }
 0x28e   : > { %v1192_v62 = vpop.f32.mrf.mxu0  ;;  %v1593_v40 = vpop.f32.mrf.mxu1  ;;  %v2287_v33 = vmax.f32 %v1360_v38, %v1761_v61 }
 0x28f   : > { %v2231_v36 = vmax.f32 %v1192_v62, %v1593_v40 }
 0x290   : > { %2731 = vmax.xlane.f32.xlu1 %v2287_v33 }
 0x291   : > { %1640 = vmatmul.f32.gmra.mxu1 %v1061_v34  ;;  %1239 = vmatmul.f32.gmra.mxu0 %v1061_v34  ;;  %v1069_v34 = vld [vmem:[#allocation3 + $0xc8] sm:$0xff] }
 0x292   : > { %1410 = vmatmul.f32.gmra.mxu2 %v1118_v63  ;;  %1811 = vmatmul.f32.gmra.mxu3 %v1118_v63 }
 0x293   : > { %2619 = vmax.xlane.f32.xlu0 %v2231_v36  ;;  %v1126_v36 = vld [vmem:[#allocation3 + $0x290] sm:$0xff] }
 0x295   : > { %v1363_v35 = vpop.f32.mrf.mxu2  ;;  %v1764_v31 = vpop.f32.mrf.mxu3 }
 0x296   : > { %v1195_v0 = vpop.f32.mrf.mxu0  ;;  %v1596_v1 = vpop.f32.mrf.mxu1  ;;  %v2288_v2 = vmax.f32 %v1363_v35, %v1764_v31 }
 0x297   : > { %v2232_v3 = vmax.f32 %v1195_v0, %v1596_v1 }
 0x298   : > { %2733 = vmax.xlane.f32.xlu2 %v2288_v2 }
 0x299   : > { %1242 = vmatmul.f32.gmra.mxu0 %v1062_v32  ;;  %1643 = vmatmul.f32.gmra.mxu1 %v1062_v32  ;;  %v1070_v32 = vld [vmem:[#allocation3 + $0xd0] sm:$0xff] }
 0x29a   : > { %1413 = vmatmul.f32.gmra.mxu2 %v1119_v29  ;;  %1814 = vmatmul.f32.gmra.mxu3 %v1119_v29 }
 0x29b   : > { %2621 = vmax.xlane.f32.xlu1 %v2232_v3  ;;  %v1127_v3 = vld [vmem:[#allocation3 + $0x298] sm:$0xff] }
 0x29d   : > { %v1366_v50 = vpop.f32.mrf.mxu2  ;;  %v1767_v30 = vpop.f32.mrf.mxu3 }
 0x29e   : > { %v1198_v37 = vpop.f32.mrf.mxu0  ;;  %v1599_v25 = vpop.f32.mrf.mxu1  ;;  %v2289_v28 = vmax.f32 %v1366_v50, %v1767_v30 }
 0x29f   : > { %v2233_v4 = vmax.f32 %v1198_v37, %v1599_v25 }
 0x2a0   : > { %2735 = vmax.xlane.f32.xlu0 %v2289_v28 }
 0x2a1   : > { %1245 = vmatmul.f32.gmra.mxu0 %v1063_v39  ;;  %1646 = vmatmul.f32.gmra.mxu1 %v1063_v39  ;;  %v1071_v39 = vld [vmem:[#allocation3 + $0xd8] sm:$0xff] }
 0x2a2   : > { %2623 = vmax.xlane.f32.xlu2 %v2233_v4  ;;  %1416 = vmatmul.f32.gmra.mxu2 %v1120_v56 }
 0x2a3   : > { %1817 = vmatmul.f32.gmra.mxu3 %v1120_v56  ;;  %v1128_v56 = vld [vmem:[#allocation3 + $0x2a0] sm:$0xff] }
 0x2a5   : > { %v1369_v5 = vpop.f32.mrf.mxu2  ;;  %v1770_v24 = vpop.f32.mrf.mxu3 }
 0x2a6   : > { %v1201_v20 = vpop.f32.mrf.mxu0  ;;  %v1602_v6 = vpop.f32.mrf.mxu1  ;;  %v2290_v22 = vmax.f32 %v1369_v5, %v1770_v24 }
 0x2a7   : > { %v2234_v8 = vmax.f32 %v1201_v20, %v1602_v6 }
 0x2a8   : > { %2737 = vmax.xlane.f32.xlu1 %v2290_v22 }
 0x2a9   : > { %1248 = vmatmul.f32.gmra.mxu0 %v1064_v7  ;;  %1649 = vmatmul.f32.gmra.mxu1 %v1064_v7  ;;  %v1072_v7 = vld [vmem:[#allocation3 + $0xe0] sm:$0xff] }
 0x2aa   : > { %2625 = vmax.xlane.f32.xlu2 %v2234_v8  ;;  %1419 = vmatmul.f32.gmra.mxu2 %v1121_v9 }
 0x2ab   : > { %1820 = vmatmul.f32.gmra.mxu3 %v1121_v9  ;;  %v1129_v9 = vld [vmem:[#allocation3 + $0x2a8] sm:$0xff] }
 0x2ad   : > { %v1372_v10 = vpop.f32.mrf.mxu2  ;;  %v1773_v11 = vpop.f32.mrf.mxu3 }
 0x2ae   : > { %v1204_v13 = vpop.f32.mrf.mxu0  ;;  %v1605_v14 = vpop.f32.mrf.mxu1  ;;  %v2291_v53 = vmax.f32 %v1372_v10, %v1773_v11 }
 0x2af   : > { %v2235_v16 = vmax.f32 %v1204_v13, %v1605_v14 }
 0x2b1   : > { %1251 = vmatmul.f32.gmra.mxu0 %v1065_v15  ;;  %1652 = vmatmul.f32.gmra.mxu1 %v1065_v15  ;;  %v1073_v15 = vld [vmem:[#allocation3 + $0xe8] sm:$0xff] }
 0x2b2   : > { %2739 = vmax.xlane.f32.xlu2 %v2291_v53  ;;  %2627 = vmax.xlane.f32.xlu0 %v2235_v16 }
 0x2b3   : > { %1422 = vmatmul.f32.gmra.mxu2 %v1122_v17  ;;  %1823 = vmatmul.f32.gmra.mxu3 %v1122_v17  ;;  %v1130_v17 = vld [vmem:[#allocation3 + $0x2b0] sm:$0xff] }
 0x2b5   : > { %v1375_v18 = vpop.f32.mrf.mxu2  ;;  %v1776_v19 = vpop.f32.mrf.mxu3 }
 0x2b6   : > { %v1207_v21 = vpop.f32.mrf.mxu0  ;;  %v1608_v26 = vpop.f32.mrf.mxu1  ;;  %v2292_v51 = vmax.f32 %v1375_v18, %v1776_v19 }
 0x2b7   : > { %v2236_v48 = vmax.f32 %v1207_v21, %v1608_v26 }
 0x2b9   : > { %1254 = vmatmul.f32.gmra.mxu0 %v1066_v49  ;;  %1655 = vmatmul.f32.gmra.mxu1 %v1066_v49  ;;  %v1074_v49 = vld [vmem:[#allocation3 + $0xf0] sm:$0xff] }
 0x2ba   : > { %2741 = vmax.xlane.f32.xlu0 %v2292_v51  ;;  %2629 = vmax.xlane.f32.xlu1 %v2236_v48 }
 0x2bb   : > { %1425 = vmatmul.f32.gmra.mxu2 %v1123_v59  ;;  %1826 = vmatmul.f32.gmra.mxu3 %v1123_v59  ;;  %v1131_v59 = vld [vmem:[#allocation3 + $0x2b8] sm:$0xff] }
 0x2bd   : > { %v1378_v52 = vpop.f32.mrf.mxu2  ;;  %v1779_v47 = vpop.f32.mrf.mxu3 }
 0x2be   : > { %v1210_v54 = vpop.f32.mrf.mxu0  ;;  %v1611_v45 = vpop.f32.mrf.mxu1  ;;  %v2293_v27 = vmax.f32 %v1378_v52, %v1779_v47 }
 0x2bf   : > { %v2237_v46 = vmax.f32 %v1210_v54, %v1611_v45 }
 0x2c1   : > { %1257 = vmatmul.f32.gmra.mxu0 %v1067_v55  ;;  %1658 = vmatmul.f32.gmra.mxu1 %v1067_v55  ;;  %v1075_v55 = vld [vmem:[#allocation3 + $0xf8] sm:$0xff] }
 0x2c2   : > { %2743 = vmax.xlane.f32.xlu1 %v2293_v27  ;;  %2631 = vmax.xlane.f32.xlu2 %v2237_v46 }
 0x2c3   : > { %1428 = vmatmul.f32.gmra.mxu2 %v1124_v43  ;;  %1829 = vmatmul.f32.gmra.mxu3 %v1124_v43 }
 0x2c5   : > { %v1381_v12 = vpop.f32.mrf.mxu2  ;;  %v1782_v57 = vpop.f32.mrf.mxu3 }
 0x2c6   : > { %v1213_v44 = vpop.f32.mrf.mxu0  ;;  %v1614_v58 = vpop.f32.mrf.mxu1  ;;  %v2294_v42 = vmax.f32 %v1381_v12, %v1782_v57  ;;  %v1132_v12 = vld [vmem:[#allocation3 + $0x2c0] sm:$0xff] }
 0x2c7   : > { %v2238_v23 = vmax.f32 %v1213_v44, %v1614_v58 }
 0x2c9   : > { %1260 = vmatmul.f32.gmra.mxu0 %v1068_v41  ;;  %1661 = vmatmul.f32.gmra.mxu1 %v1068_v41 }
 0x2ca   : > { %2745 = vmax.xlane.f32.xlu2 %v2294_v42  ;;  %2633 = vmax.xlane.f32.xlu0 %v2238_v23  ;;  %v1076_v42 = vld [vmem:[#allocation3 + $0x100] sm:$0xff] }
 0x2cb   : > { %1431 = vmatmul.f32.gmra.mxu2 %v1125_v60  ;;  %1832 = vmatmul.f32.gmra.mxu3 %v1125_v60 }
 0x2cd   : > { %v1384_v38 = vpop.f32.mrf.mxu2  ;;  %v1785_v61 = vpop.f32.mrf.mxu3 }
 0x2ce   : > { %v1216_v62 = vpop.f32.mrf.mxu0  ;;  %v1617_v40 = vpop.f32.mrf.mxu1  ;;  %v2295_v63 = vmax.f32 %v1384_v38, %v1785_v61 }
 0x2cf   : > { %v2239_v33 = vmax.f32 %v1216_v62, %v1617_v40  ;;  %v1133_v62 = vld [vmem:[#allocation3 + $0x2c8] sm:$0xff] }
 0x2d1   : > { %1263 = vmatmul.f32.gmra.mxu0 %v1069_v34  ;;  %1664 = vmatmul.f32.gmra.mxu1 %v1069_v34 }
 0x2d2   : > { %2747 = vmax.xlane.f32.xlu0 %v2295_v63  ;;  %2635 = vmax.xlane.f32.xlu1 %v2239_v33 }
 0x2d3   : > { %1434 = vmatmul.f32.gmra.mxu2 %v1126_v36  ;;  %1835 = vmatmul.f32.gmra.mxu3 %v1126_v36 }
 0x2d5   : > { %v1387_v35 = vpop.f32.mrf.mxu2  ;;  %v1788_v31 = vpop.f32.mrf.mxu3 }
 0x2d6   : > { %v1219_v0 = vpop.f32.mrf.mxu0  ;;  %v1620_v1 = vpop.f32.mrf.mxu1  ;;  %v2296_v29 = vmax.f32 %v1387_v35, %v1788_v31  ;;  %v1077_v35 = vld [vmem:[#allocation3 + $0x108] sm:$0xff] }
 0x2d7   : > { %v2240_v2 = vmax.f32 %v1219_v0, %v1620_v1 }
 0x2d9   : > { %1266 = vmatmul.f32.gmra.mxu0 %v1070_v32  ;;  %1667 = vmatmul.f32.gmra.mxu1 %v1070_v32  ;;  %v1134_v32 = vld [vmem:[#allocation3 + $0x2d0] sm:$0xff] }
 0x2da   : > { %2749 = vmax.xlane.f32.xlu1 %v2296_v29  ;;  %2637 = vmax.xlane.f32.xlu2 %v2240_v2 }
 0x2db   : > { %1437 = vmatmul.f32.gmra.mxu2 %v1127_v3  ;;  %1838 = vmatmul.f32.gmra.mxu3 %v1127_v3 }
 0x2dd   : > { %v1390_v50 = vpop.f32.mrf.mxu2  ;;  %v1791_v30 = vpop.f32.mrf.mxu3 }
 0x2de   : > { %v1222_v37 = vpop.f32.mrf.mxu0  ;;  %v1623_v25 = vpop.f32.mrf.mxu1  ;;  %v2297_v4 = vmax.f32 %v1390_v50, %v1791_v30 }
 0x2df   : > { %v2241_v28 = vmax.f32 %v1222_v37, %v1623_v25  ;;  %v1078_v37 = vld [vmem:[#allocation3 + $0x110] sm:$0xff] }
 0x2e1   : > { %1269 = vmatmul.f32.gmra.mxu0 %v1071_v39  ;;  %1670 = vmatmul.f32.gmra.mxu1 %v1071_v39 }
 0x2e2   : > { %2751 = vmax.xlane.f32.xlu2 %v2297_v4  ;;  %2639 = vmax.xlane.f32.xlu0 %v2241_v28  ;;  %v1135_v4 = vld [vmem:[#allocation3 + $0x2d8] sm:$0xff] }
 0x2e3   : > { %1440 = vmatmul.f32.gmra.mxu2 %v1128_v56  ;;  %1841 = vmatmul.f32.gmra.mxu3 %v1128_v56 }
 0x2e5   : > { %v1393_v5 = vpop.f32.mrf.mxu2  ;;  %v1794_v24 = vpop.f32.mrf.mxu3 }
 0x2e6   : > { %v1225_v20 = vpop.f32.mrf.mxu0  ;;  %v1626_v6 = vpop.f32.mrf.mxu1  ;;  %v2298_v8 = vmax.f32 %v1393_v5, %v1794_v24 }
 0x2e7   : > { %v2242_v22 = vmax.f32 %v1225_v20, %v1626_v6 }
 0x2e9   : > { %1272 = vmatmul.f32.gmra.mxu0 %v1072_v7  ;;  %1673 = vmatmul.f32.gmra.mxu1 %v1072_v7  ;;  %v1079_v7 = vld [vmem:[#allocation3 + $0x118] sm:$0xff] }
 0x2ea   : > { %2753 = vmax.xlane.f32.xlu0 %v2298_v8  ;;  %2641 = vmax.xlane.f32.xlu1 %v2242_v22 }
 0x2eb   : > { %1443 = vmatmul.f32.gmra.mxu2 %v1129_v9  ;;  %1844 = vmatmul.f32.gmra.mxu3 %v1129_v9 }
 0x2ed   : > { %v1396_v10 = vpop.f32.mrf.mxu2  ;;  %v1797_v11 = vpop.f32.mrf.mxu3 }
 0x2ee   : > { %v1228_v13 = vpop.f32.mrf.mxu0  ;;  %v1629_v14 = vpop.f32.mrf.mxu1  ;;  %v2299_v53 = vmax.f32 %v1396_v10, %v1797_v11  ;;  %v1136_v10 = vld [vmem:[#allocation3 + $0x2e0] sm:$0xff] }
 0x2ef   : > { %v2243_v16 = vmax.f32 %v1228_v13, %v1629_v14 }
 0x2f1   : > { %1275 = vmatmul.f32.gmra.mxu0 %v1073_v15  ;;  %1676 = vmatmul.f32.gmra.mxu1 %v1073_v15 }
 0x2f2   : > { %2755 = vmax.xlane.f32.xlu1 %v2299_v53  ;;  %2643 = vmax.xlane.f32.xlu2 %v2243_v16  ;;  %v1080_v16 = vld [vmem:[#allocation3 + $0x120] sm:$0xff] }
 0x2f3   : > { %1446 = vmatmul.f32.gmra.mxu2 %v1130_v17  ;;  %1847 = vmatmul.f32.gmra.mxu3 %v1130_v17 }
 0x2f5   : > { %v1399_v18 = vpop.f32.mrf.mxu2  ;;  %v1800_v19 = vpop.f32.mrf.mxu3 }
 0x2f6   : > { %v1231_v21 = vpop.f32.mrf.mxu0  ;;  %v1632_v26 = vpop.f32.mrf.mxu1  ;;  %v2300_v51 = vmax.f32 %v1399_v18, %v1800_v19 }
 0x2f7   : > { %v2244_v48 = vmax.f32 %v1231_v21, %v1632_v26  ;;  %v1137_v21 = vld [vmem:[#allocation3 + $0x2e8] sm:$0xff] }
 0x2f9   : > { %1278 = vmatmul.f32.gmra.mxu0 %v1074_v49  ;;  %1679 = vmatmul.f32.gmra.mxu1 %v1074_v49 }
 0x2fa   : > { %2757 = vmax.xlane.f32.xlu2 %v2300_v51  ;;  %2645 = vmax.xlane.f32.xlu0 %v2244_v48 }
 0x2fb   : > { %1449 = vmatmul.f32.gmra.mxu2 %v1131_v59  ;;  %1850 = vmatmul.f32.gmra.mxu3 %v1131_v59  ;;  %v1081_v59 = vld [vmem:[#allocation3 + $0x128] sm:$0xff] }
 0x2fd   : > { %v1402_v52 = vpop.f32.mrf.mxu2  ;;  %v1803_v47 = vpop.f32.mrf.mxu3 }
 0x2fe   : > { %v1234_v54 = vpop.f32.mrf.mxu0  ;;  %v1635_v45 = vpop.f32.mrf.mxu1  ;;  %v2301_v43 = vmax.f32 %v1402_v52, %v1803_v47 }
 0x2ff   : > { %v2245_v46 = vmax.f32 %v1234_v54, %v1635_v45  ;;  %v2618_v27 = vpop.xlane.xlu2 %2617 }
 0x300   : > { %2874 = vst.msk [vmem:[%s3690_s12] sm:$0xff] %vm2873_vm1, %v2618_v27 }
 0x301   : > { %1281 = vmatmul.f32.gmra.mxu0 %v1075_v55  ;;  %1682 = vmatmul.f32.gmra.mxu1 %v1075_v55  ;;  %v1138_v55 = vld [vmem:[#allocation3 + $0x2f0] sm:$0xff] }
 0x302   : > { %2759 = vmax.xlane.f32.xlu0 %v2301_v43  ;;  %2647 = vmax.xlane.f32.xlu1 %v2245_v46 }
 0x303   : > { %1452 = vmatmul.f32.gmra.mxu2 %v1132_v12  ;;  %1853 = vmatmul.f32.gmra.mxu3 %v1132_v12  ;;  %v2732_v57 = vpop.xlane.xlu1 %2731 }
 0x304   : > { %2931 = vst.msk [vmem:[%s3690_s12 + $0x1c8] sm:$0xff] %vm2873_vm1, %v2732_v57  ;;  %v1082_v57 = vld [vmem:[#allocation3 + $0x130] sm:$0xff] }
 0x305   : > { %v1405_v44 = vpop.f32.mrf.mxu2  ;;  %v1806_v58 = vpop.f32.mrf.mxu3 }
 0x306   : > { %v1237_v41 = vpop.f32.mrf.mxu0  ;;  %v1638_v23 = vpop.f32.mrf.mxu1  ;;  %v2302_v61 = vmax.f32 %v1405_v44, %v1806_v58 }
 0x307   : > { %v2246_v60 = vmax.f32 %v1237_v41, %v1638_v23  ;;  %v2620_v38 = vpop.xlane.xlu0 %2619 }
 0x308   : > { %2875 = vst.msk [vmem:[%s3690_s12 + $0x8] sm:$0xff] %vm2873_vm1, %v2620_v38 }
 0x309   : > { %1284 = vmatmul.f32.gmra.mxu0 %v1076_v42  ;;  %1685 = vmatmul.f32.gmra.mxu1 %v1076_v42  ;;  %v1139_v42 = vld [vmem:[#allocation3 + $0x2f8] sm:$0xff] }
 0x30a   : > { %2761 = vmax.xlane.f32.xlu1 %v2302_v61  ;;  %2649 = vmax.xlane.f32.xlu2 %v2246_v60 }
 0x30b   : > { %1455 = vmatmul.f32.gmra.mxu2 %v1133_v62  ;;  %1856 = vmatmul.f32.gmra.mxu3 %v1133_v62  ;;  %v2734_v40 = vpop.xlane.xlu2 %2733 }
 0x30c   : > { %2932 = vst.msk [vmem:[%s3690_s12 + $0x1d0] sm:$0xff] %vm2873_vm1, %v2734_v40  ;;  %v1083_v40 = vld [vmem:[#allocation3 + $0x138] sm:$0xff] }
 0x30d   : > { %v1408_v34 = vpop.f32.mrf.mxu2  ;;  %v1809_v33 = vpop.f32.mrf.mxu3 }
 0x30e   : > { %v1240_v63 = vpop.f32.mrf.mxu0  ;;  %v1641_v36 = vpop.f32.mrf.mxu1  ;;  %v2303_v1 = vmax.f32 %v1408_v34, %v1809_v33 }
 0x30f   : > { %v2247_v31 = vmax.f32 %v1240_v63, %v1641_v36  ;;  %v2622_v0 = vpop.xlane.xlu1 %2621 }
 0x310   : > { %2876 = vst.msk [vmem:[%s3690_s12 + $0x10] sm:$0xff] %vm2873_vm1, %v2622_v0 }
 0x311   : > { %1287 = vmatmul.f32.gmra.mxu0 %v1077_v35  ;;  %1688 = vmatmul.f32.gmra.mxu1 %v1077_v35  ;;  %v1140_v35 = vld [vmem:[#allocation3 + $0x300] sm:$0xff] }
 0x312   : > { %2763 = vmax.xlane.f32.xlu2 %v2303_v1  ;;  %2651 = vmax.xlane.f32.xlu0 %v2247_v31 }
 0x313   : > { %1458 = vmatmul.f32.gmra.mxu2 %v1134_v32  ;;  %1859 = vmatmul.f32.gmra.mxu3 %v1134_v32  ;;  %v2736_v2 = vpop.xlane.xlu0 %2735 }
 0x314   : > { %2933 = vst.msk [vmem:[%s3690_s12 + $0x1d8] sm:$0xff] %vm2873_vm1, %v2736_v2  ;;  %v1084_v2 = vld [vmem:[#allocation3 + $0x140] sm:$0xff] }
 0x315   : > { %v2624_v29 = vpop.xlane.xlu2 %2623  ;;  %v1411_v3 = vpop.f32.mrf.mxu2 }
 0x316   : > { %2877 = vst.msk [vmem:[%s3690_s12 + $0x18] sm:$0xff] %vm2873_vm1, %v2624_v29  ;;  %v1243_v50 = vpop.f32.mrf.mxu0  ;;  %v1644_v30 = vpop.f32.mrf.mxu1 }
 0x317   : > { %v1812_v25 = vpop.f32.mrf.mxu3  ;;  %v2248_v39 = vmax.f32 %v1243_v50, %v1644_v30 }
 0x318   : > { %v2304_v28 = vmax.f32 %v1411_v3, %v1812_v25 }
 0x319   : > { %1290 = vmatmul.f32.gmra.mxu0 %v1078_v37  ;;  %1691 = vmatmul.f32.gmra.mxu1 %v1078_v37  ;;  %v1141_v37 = vld [vmem:[#allocation3 + $0x308] sm:$0xff] }
 0x31a   : > { %2765 = vmax.xlane.f32.xlu0 %v2304_v28  ;;  %2653 = vmax.xlane.f32.xlu1 %v2248_v39 }
 0x31b   : > { %1461 = vmatmul.f32.gmra.mxu2 %v1135_v4  ;;  %1862 = vmatmul.f32.gmra.mxu3 %v1135_v4  ;;  %v2738_v56 = vpop.xlane.xlu1 %2737 }
 0x31c   : > { %2934 = vst.msk [vmem:[%s3690_s12 + $0x1e0] sm:$0xff] %vm2873_vm1, %v2738_v56  ;;  %v1085_v56 = vld [vmem:[#allocation3 + $0x148] sm:$0xff] }
 0x31d   : > { %v2626_v5 = vpop.xlane.xlu2 %2625  ;;  %v1414_v24 = vpop.f32.mrf.mxu2 }
 0x31e   : > { %2878 = vst.msk [vmem:[%s3690_s12 + $0x20] sm:$0xff] %vm2873_vm1, %v2626_v5  ;;  %v1246_v20 = vpop.f32.mrf.mxu0  ;;  %v1647_v6 = vpop.f32.mrf.mxu1 }
 0x31f   : > { %v1815_v22 = vpop.f32.mrf.mxu3  ;;  %v2249_v8 = vmax.f32 %v1246_v20, %v1647_v6 }
 0x320   : > { %v2305_v9 = vmax.f32 %v1414_v24, %v1815_v22 }
 0x321   : > { %1293 = vmatmul.f32.gmra.mxu0 %v1079_v7  ;;  %1694 = vmatmul.f32.gmra.mxu1 %v1079_v7  ;;  %v1142_v7 = vld [vmem:[#allocation3 + $0x310] sm:$0xff] }
 0x322   : > { %2767 = vmax.xlane.f32.xlu1 %v2305_v9  ;;  %2655 = vmax.xlane.f32.xlu2 %v2249_v8 }
 0x323   : > { %1464 = vmatmul.f32.gmra.mxu2 %v1136_v10  ;;  %1865 = vmatmul.f32.gmra.mxu3 %v1136_v10 }
 0x325   : > { %v2740_v11 = vpop.xlane.xlu2 %2739  ;;  %v2628_v13 = vpop.xlane.xlu0 %2627 }
 0x326   : > { %2935 = vst.msk [vmem:[%s3690_s12 + $0x1e8] sm:$0xff] %vm2873_vm1, %v2740_v11  ;;  %v1249_v14 = vpop.f32.mrf.mxu0  ;;  %v1417_v15 = vpop.f32.mrf.mxu2  ;;  %v1086_v11 = vld [vmem:[#allocation3 + $0x150] sm:$0xff] }
 0x327   : > { %2879 = vst.msk [vmem:[%s3690_s12 + $0x28] sm:$0xff] %vm2873_vm1, %v2628_v13  ;;  %v1650_v53 = vpop.f32.mrf.mxu1  ;;  %v1818_v17 = vpop.f32.mrf.mxu3 }
 0x328   : > { %v2306_v18 = vmax.f32 %v1417_v15, %v1818_v17  ;;  %v2250_v19 = vmax.f32 %v1249_v14, %v1650_v53  ;;  %v1143_v53 = vld [vmem:[#allocation3 + $0x318] sm:$0xff] }
 0x329   : > { %1296 = vmatmul.f32.gmra.mxu0 %v1080_v16  ;;  %1697 = vmatmul.f32.gmra.mxu1 %v1080_v16 }
 0x32a   : > { %2769 = vmax.xlane.f32.xlu2 %v2306_v18  ;;  %2657 = vmax.xlane.f32.xlu0 %v2250_v19 }
 0x32b   : > { %1467 = vmatmul.f32.gmra.mxu2 %v1137_v21  ;;  %1868 = vmatmul.f32.gmra.mxu3 %v1137_v21 }
 0x32d   : > { %v2742_v26 = vpop.xlane.xlu0 %2741  ;;  %v2630_v49 = vpop.xlane.xlu1 %2629 }
 0x32e   : > { %2936 = vst.msk [vmem:[%s3690_s12 + $0x1f0] sm:$0xff] %vm2873_vm1, %v2742_v26  ;;  %v1252_v48 = vpop.f32.mrf.mxu0  ;;  %v1420_v51 = vpop.f32.mrf.mxu2  ;;  %v1087_v26 = vld [vmem:[#allocation3 + $0x158] sm:$0xff] }
 0x32f   : > { %2880 = vst.msk [vmem:[%s3690_s12 + $0x30] sm:$0xff] %vm2873_vm1, %v2630_v49  ;;  %v1653_v52 = vpop.f32.mrf.mxu1  ;;  %v1821_v47 = vpop.f32.mrf.mxu3 }
 0x330   : > { %v2307_v54 = vmax.f32 %v1420_v51, %v1821_v47  ;;  %v2251_v45 = vmax.f32 %v1252_v48, %v1653_v52  ;;  %v1144_v52 = vld [vmem:[#allocation3 + $0x320] sm:$0xff] }
 0x331   : > { %1299 = vmatmul.f32.gmra.mxu0 %v1081_v59  ;;  %1700 = vmatmul.f32.gmra.mxu1 %v1081_v59 }
 0x332   : > { %2771 = vmax.xlane.f32.xlu0 %v2307_v54  ;;  %2659 = vmax.xlane.f32.xlu1 %v2251_v45 }
 0x333   : > { %1470 = vmatmul.f32.gmra.mxu2 %v1138_v55  ;;  %1871 = vmatmul.f32.gmra.mxu3 %v1138_v55 }
 0x335   : > { %v2744_v46 = vpop.xlane.xlu1 %2743  ;;  %v2632_v27 = vpop.xlane.xlu2 %2631 }
 0x336   : > { %2937 = vst.msk [vmem:[%s3690_s12 + $0x1f8] sm:$0xff] %vm2873_vm1, %v2744_v46  ;;  %v1255_v43 = vpop.f32.mrf.mxu0  ;;  %v1423_v12 = vpop.f32.mrf.mxu2  ;;  %v1088_v46 = vld [vmem:[#allocation3 + $0x160] sm:$0xff] }
 0x337   : > { %2881 = vst.msk [vmem:[%s3690_s12 + $0x38] sm:$0xff] %vm2873_vm1, %v2632_v27  ;;  %v1656_v44 = vpop.f32.mrf.mxu1  ;;  %v1824_v58 = vpop.f32.mrf.mxu3 }
 0x338   : > { %v2308_v41 = vmax.f32 %v1423_v12, %v1824_v58  ;;  %v2252_v23 = vmax.f32 %v1255_v43, %v1656_v44  ;;  %v1145_v44 = vld [vmem:[#allocation3 + $0x328] sm:$0xff] }
 0x339   : > { %1302 = vmatmul.f32.gmra.mxu0 %v1082_v57  ;;  %1703 = vmatmul.f32.gmra.mxu1 %v1082_v57 }
 0x33a   : > { %2773 = vmax.xlane.f32.xlu1 %v2308_v41  ;;  %2661 = vmax.xlane.f32.xlu2 %v2252_v23 }
 0x33b   : > { %1473 = vmatmul.f32.gmra.mxu2 %v1139_v42  ;;  %1874 = vmatmul.f32.gmra.mxu3 %v1139_v42 }
 0x33d   : > { %v2746_v60 = vpop.xlane.xlu2 %2745  ;;  %v2634_v38 = vpop.xlane.xlu0 %2633 }
 0x33e   : > { %2938 = vst.msk [vmem:[%s3690_s12 + $0x200] sm:$0xff] %vm2873_vm1, %v2746_v60  ;;  %v1258_v61 = vpop.f32.mrf.mxu0  ;;  %v1426_v62 = vpop.f32.mrf.mxu2  ;;  %v1089_v60 = vld [vmem:[#allocation3 + $0x168] sm:$0xff] }
 0x33f   : > { %2882 = vst.msk [vmem:[%s3690_s12 + $0x40] sm:$0xff] %vm2873_vm1, %v2634_v38  ;;  %v1659_v34 = vpop.f32.mrf.mxu1  ;;  %v1827_v33 = vpop.f32.mrf.mxu3 }
 0x340   : > { %v2309_v63 = vmax.f32 %v1426_v62, %v1827_v33  ;;  %v2253_v36 = vmax.f32 %v1258_v61, %v1659_v34  ;;  %v1146_v34 = vld [vmem:[#allocation3 + $0x330] sm:$0xff] }
 0x341   : > { %1305 = vmatmul.f32.gmra.mxu0 %v1083_v40  ;;  %1706 = vmatmul.f32.gmra.mxu1 %v1083_v40 }
 0x342   : > { %2775 = vmax.xlane.f32.xlu2 %v2309_v63  ;;  %2663 = vmax.xlane.f32.xlu0 %v2253_v36 }
 0x343   : > { %1476 = vmatmul.f32.gmra.mxu2 %v1140_v35  ;;  %1877 = vmatmul.f32.gmra.mxu3 %v1140_v35 }
 0x345   : > { %v2748_v31 = vpop.xlane.xlu0 %2747  ;;  %v2636_v0 = vpop.xlane.xlu1 %2635 }
 0x346   : > { %2939 = vst.msk [vmem:[%s3690_s12 + $0x208] sm:$0xff] %vm2873_vm1, %v2748_v31  ;;  %v1261_v1 = vpop.f32.mrf.mxu0  ;;  %v1429_v32 = vpop.f32.mrf.mxu2  ;;  %v1090_v31 = vld [vmem:[#allocation3 + $0x170] sm:$0xff] }
 0x347   : > { %2883 = vst.msk [vmem:[%s3690_s12 + $0x48] sm:$0xff] %vm2873_vm1, %v2636_v0  ;;  %v1662_v29 = vpop.f32.mrf.mxu1  ;;  %v1830_v3 = vpop.f32.mrf.mxu3 }
 0x348   : > { %v2310_v50 = vmax.f32 %v1429_v32, %v1830_v3  ;;  %v2254_v30 = vmax.f32 %v1261_v1, %v1662_v29  ;;  %v1147_v29 = vld [vmem:[#allocation3 + $0x338] sm:$0xff] }
 0x349   : > { %1308 = vmatmul.f32.gmra.mxu0 %v1084_v2  ;;  %1709 = vmatmul.f32.gmra.mxu1 %v1084_v2 }
 0x34a   : > { %2777 = vmax.xlane.f32.xlu0 %v2310_v50  ;;  %2665 = vmax.xlane.f32.xlu1 %v2254_v30 }
 0x34b   : > { %1479 = vmatmul.f32.gmra.mxu2 %v1141_v37  ;;  %1880 = vmatmul.f32.gmra.mxu3 %v1141_v37 }
 0x34d   : > { %v2750_v25 = vpop.xlane.xlu1 %2749  ;;  %v2638_v39 = vpop.xlane.xlu2 %2637 }
 0x34e   : > { %2940 = vst.msk [vmem:[%s3690_s12 + $0x210] sm:$0xff] %vm2873_vm1, %v2750_v25  ;;  %v1264_v28 = vpop.f32.mrf.mxu0  ;;  %v1432_v4 = vpop.f32.mrf.mxu2  ;;  %v1091_v25 = vld [vmem:[#allocation3 + $0x178] sm:$0xff] }
 0x34f   : > { %2884 = vst.msk [vmem:[%s3690_s12 + $0x50] sm:$0xff] %vm2873_vm1, %v2638_v39  ;;  %v1665_v5 = vpop.f32.mrf.mxu1  ;;  %v1833_v24 = vpop.f32.mrf.mxu3 }
 0x350   : > { %v2311_v20 = vmax.f32 %v1432_v4, %v1833_v24  ;;  %v2255_v6 = vmax.f32 %v1264_v28, %v1665_v5  ;;  %v1148_v5 = vld [vmem:[#allocation3 + $0x340] sm:$0xff] }
 0x351   : > { %1311 = vmatmul.f32.gmra.mxu0 %v1085_v56  ;;  %1712 = vmatmul.f32.gmra.mxu1 %v1085_v56 }
 0x352   : > { %2779 = vmax.xlane.f32.xlu1 %v2311_v20  ;;  %2667 = vmax.xlane.f32.xlu2 %v2255_v6 }
 0x353   : > { %1482 = vmatmul.f32.gmra.mxu2 %v1142_v7  ;;  %1883 = vmatmul.f32.gmra.mxu3 %v1142_v7 }
 0x355   : > { %v2752_v22 = vpop.xlane.xlu2 %2751  ;;  %v2640_v8 = vpop.xlane.xlu0 %2639 }
 0x356   : > { %2941 = vst.msk [vmem:[%s3690_s12 + $0x218] sm:$0xff] %vm2873_vm1, %v2752_v22  ;;  %v1267_v9 = vpop.f32.mrf.mxu0  ;;  %v1435_v10 = vpop.f32.mrf.mxu2  ;;  %v1092_v22 = vld [vmem:[#allocation3 + $0x180] sm:$0xff] }
 0x357   : > { %2885 = vst.msk [vmem:[%s3690_s12 + $0x58] sm:$0xff] %vm2873_vm1, %v2640_v8  ;;  %v1668_v13 = vpop.f32.mrf.mxu1  ;;  %v1836_v14 = vpop.f32.mrf.mxu3 }
 0x358   : > { %v2312_v15 = vmax.f32 %v1435_v10, %v1836_v14  ;;  %v2256_v16 = vmax.f32 %v1267_v9, %v1668_v13  ;;  %v1149_v13 = vld [vmem:[#allocation3 + $0x348] sm:$0xff] }
 0x359   : > { %1314 = vmatmul.f32.gmra.mxu0 %v1086_v11  ;;  %1715 = vmatmul.f32.gmra.mxu1 %v1086_v11 }
 0x35a   : > { %2781 = vmax.xlane.f32.xlu2 %v2312_v15  ;;  %2669 = vmax.xlane.f32.xlu0 %v2256_v16 }
 0x35b   : > { %1485 = vmatmul.f32.gmra.mxu2 %v1143_v53  ;;  %1886 = vmatmul.f32.gmra.mxu3 %v1143_v53 }
 0x35d   : > { %v2754_v17 = vpop.xlane.xlu0 %2753  ;;  %v2642_v18 = vpop.xlane.xlu1 %2641 }
 0x35e   : > { %2942 = vst.msk [vmem:[%s3690_s12 + $0x220] sm:$0xff] %vm2873_vm1, %v2754_v17  ;;  %v1270_v19 = vpop.f32.mrf.mxu0  ;;  %v1438_v21 = vpop.f32.mrf.mxu2  ;;  %v1093_v17 = vld [vmem:[#allocation3 + $0x188] sm:$0xff] }
 0x35f   : > { %2886 = vst.msk [vmem:[%s3690_s12 + $0x60] sm:$0xff] %vm2873_vm1, %v2642_v18  ;;  %v1671_v49 = vpop.f32.mrf.mxu1  ;;  %v1839_v48 = vpop.f32.mrf.mxu3 }
 0x360   : > { %v2313_v51 = vmax.f32 %v1438_v21, %v1839_v48  ;;  %v2257_v59 = vmax.f32 %v1270_v19, %v1671_v49  ;;  %v1150_v49 = vld [vmem:[#allocation3 + $0x350] sm:$0xff] }
 0x361   : > { %1317 = vmatmul.f32.gmra.mxu0 %v1087_v26  ;;  %1718 = vmatmul.f32.gmra.mxu1 %v1087_v26 }
 0x362   : > { %2783 = vmax.xlane.f32.xlu0 %v2313_v51  ;;  %2671 = vmax.xlane.f32.xlu1 %v2257_v59 }
 0x363   : > { %1488 = vmatmul.f32.gmra.mxu2 %v1144_v52  ;;  %1889 = vmatmul.f32.gmra.mxu3 %v1144_v52 }
 0x365   : > { %v2756_v47 = vpop.xlane.xlu1 %2755  ;;  %v2644_v54 = vpop.xlane.xlu2 %2643 }
 0x366   : > { %2943 = vst.msk [vmem:[%s3690_s12 + $0x228] sm:$0xff] %vm2873_vm1, %v2756_v47  ;;  %v1273_v45 = vpop.f32.mrf.mxu0  ;;  %v1441_v55 = vpop.f32.mrf.mxu2  ;;  %v1094_v47 = vld [vmem:[#allocation3 + $0x190] sm:$0xff] }
 0x367   : > { %2887 = vst.msk [vmem:[%s3690_s12 + $0x68] sm:$0xff] %vm2873_vm1, %v2644_v54  ;;  %v1674_v27 = vpop.f32.mrf.mxu1  ;;  %v1842_v43 = vpop.f32.mrf.mxu3 }
 0x368   : > { %v2314_v12 = vmax.f32 %v1441_v55, %v1842_v43  ;;  %v2258_v57 = vmax.f32 %v1273_v45, %v1674_v27  ;;  %v1151_v27 = vld [vmem:[#allocation3 + $0x358] sm:$0xff] }
 0x369   : > { %1320 = vmatmul.f32.gmra.mxu0 %v1088_v46  ;;  %1721 = vmatmul.f32.gmra.mxu1 %v1088_v46 }
 0x36a   : > { %2785 = vmax.xlane.f32.xlu1 %v2314_v12  ;;  %2673 = vmax.xlane.f32.xlu2 %v2258_v57 }
 0x36b   : > { %1491 = vmatmul.f32.gmra.mxu2 %v1145_v44  ;;  %1892 = vmatmul.f32.gmra.mxu3 %v1145_v44 }
 0x36d   : > { %v2758_v58 = vpop.xlane.xlu2 %2757  ;;  %v2646_v41 = vpop.xlane.xlu0 %2645 }
 0x36e   : > { %2944 = vst.msk [vmem:[%s3690_s12 + $0x230] sm:$0xff] %vm2873_vm1, %v2758_v58  ;;  %v1276_v23 = vpop.f32.mrf.mxu0  ;;  %v1444_v42 = vpop.f32.mrf.mxu2  ;;  %v1095_v58 = vld [vmem:[#allocation3 + $0x198] sm:$0xff] }
 0x36f   : > { %2888 = vst.msk [vmem:[%s3690_s12 + $0x70] sm:$0xff] %vm2873_vm1, %v2646_v41  ;;  %v1677_v38 = vpop.f32.mrf.mxu1  ;;  %v1845_v61 = vpop.f32.mrf.mxu3 }
 0x370   : > { %v2315_v62 = vmax.f32 %v1444_v42, %v1845_v61  ;;  %v2259_v40 = vmax.f32 %v1276_v23, %v1677_v38  ;;  %v1152_v38 = vld [vmem:[#allocation3 + $0x360] sm:$0xff] }
 0x371   : > { %1323 = vmatmul.f32.gmra.mxu0 %v1089_v60  ;;  %1724 = vmatmul.f32.gmra.mxu1 %v1089_v60 }
 0x372   : > { %2787 = vmax.xlane.f32.xlu2 %v2315_v62  ;;  %2675 = vmax.xlane.f32.xlu0 %v2259_v40 }
 0x373   : > { %1494 = vmatmul.f32.gmra.mxu2 %v1146_v34  ;;  %1895 = vmatmul.f32.gmra.mxu3 %v1146_v34 }
 0x375   : > { %v2760_v33 = vpop.xlane.xlu0 %2759  ;;  %v2648_v63 = vpop.xlane.xlu1 %2647 }
 0x376   : > { %2945 = vst.msk [vmem:[%s3690_s12 + $0x238] sm:$0xff] %vm2873_vm1, %v2760_v33  ;;  %v1279_v36 = vpop.f32.mrf.mxu0  ;;  %v1447_v35 = vpop.f32.mrf.mxu2  ;;  %v1096_v33 = vld [vmem:[#allocation3 + $0x1a0] sm:$0xff] }
 0x377   : > { %2889 = vst.msk [vmem:[%s3690_s12 + $0x78] sm:$0xff] %vm2873_vm1, %v2648_v63  ;;  %v1680_v0 = vpop.f32.mrf.mxu1  ;;  %v1848_v1 = vpop.f32.mrf.mxu3 }
 0x378   : > { %v2316_v32 = vmax.f32 %v1447_v35, %v1848_v1  ;;  %v2260_v2 = vmax.f32 %v1279_v36, %v1680_v0  ;;  %v1153_v0 = vld [vmem:[#allocation3 + $0x368] sm:$0xff] }
 0x379   : > { %1326 = vmatmul.f32.gmra.mxu0 %v1090_v31  ;;  %1727 = vmatmul.f32.gmra.mxu1 %v1090_v31 }
 0x37a   : > { %2789 = vmax.xlane.f32.xlu0 %v2316_v32  ;;  %2677 = vmax.xlane.f32.xlu1 %v2260_v2 }
 0x37b   : > { %1497 = vmatmul.f32.gmra.mxu2 %v1147_v29  ;;  %1898 = vmatmul.f32.gmra.mxu3 %v1147_v29 }
 0x37d   : > { %v2762_v3 = vpop.xlane.xlu1 %2761  ;;  %v2650_v50 = vpop.xlane.xlu2 %2649 }
 0x37e   : > { %2946 = vst.msk [vmem:[%s3690_s12 + $0x240] sm:$0xff] %vm2873_vm1, %v2762_v3  ;;  %v1282_v30 = vpop.f32.mrf.mxu0  ;;  %v1450_v37 = vpop.f32.mrf.mxu2  ;;  %v1097_v3 = vld [vmem:[#allocation3 + $0x1a8] sm:$0xff] }
 0x37f   : > { %2890 = vst.msk [vmem:[%s3690_s12 + $0x80] sm:$0xff] %vm2873_vm1, %v2650_v50  ;;  %v1683_v39 = vpop.f32.mrf.mxu1  ;;  %v1851_v28 = vpop.f32.mrf.mxu3 }
 0x380   : > { %v2317_v4 = vmax.f32 %v1450_v37, %v1851_v28  ;;  %v2261_v56 = vmax.f32 %v1282_v30, %v1683_v39  ;;  %v1154_v39 = vld [vmem:[#allocation3 + $0x370] sm:$0xff] }
 0x381   : > { %1329 = vmatmul.f32.gmra.mxu0 %v1091_v25  ;;  %1730 = vmatmul.f32.gmra.mxu1 %v1091_v25 }
 0x382   : > { %2791 = vmax.xlane.f32.xlu1 %v2317_v4  ;;  %2679 = vmax.xlane.f32.xlu2 %v2261_v56 }
 0x383   : > { %1500 = vmatmul.f32.gmra.mxu2 %v1148_v5  ;;  %1901 = vmatmul.f32.gmra.mxu3 %v1148_v5 }
 0x385   : > { %v2764_v24 = vpop.xlane.xlu2 %2763  ;;  %v2652_v20 = vpop.xlane.xlu0 %2651 }
 0x386   : > { %2947 = vst.msk [vmem:[%s3690_s12 + $0x248] sm:$0xff] %vm2873_vm1, %v2764_v24  ;;  %v1285_v6 = vpop.f32.mrf.mxu0  ;;  %v1453_v7 = vpop.f32.mrf.mxu2  ;;  %v1098_v24 = vld [vmem:[#allocation3 + $0x1b0] sm:$0xff] }
 0x387   : > { %2891 = vst.msk [vmem:[%s3690_s12 + $0x88] sm:$0xff] %vm2873_vm1, %v2652_v20  ;;  %v1686_v8 = vpop.f32.mrf.mxu1  ;;  %v1854_v9 = vpop.f32.mrf.mxu3 }
 0x388   : > { %v2318_v10 = vmax.f32 %v1453_v7, %v1854_v9  ;;  %v2262_v11 = vmax.f32 %v1285_v6, %v1686_v8  ;;  %v1155_v8 = vld [vmem:[#allocation3 + $0x378] sm:$0xff] }
 0x389   : > { %1332 = vmatmul.f32.gmra.mxu0 %v1092_v22  ;;  %1733 = vmatmul.f32.gmra.mxu1 %v1092_v22 }
 0x38a   : > { %2793 = vmax.xlane.f32.xlu2 %v2318_v10  ;;  %2681 = vmax.xlane.f32.xlu0 %v2262_v11 }
 0x38b   : > { %1503 = vmatmul.f32.gmra.mxu2 %v1149_v13  ;;  %1904 = vmatmul.f32.gmra.mxu3 %v1149_v13 }
 0x38d   : > { %v2766_v14 = vpop.xlane.xlu0 %2765  ;;  %v2654_v15 = vpop.xlane.xlu1 %2653 }
 0x38e   : > { %2948 = vst.msk [vmem:[%s3690_s12 + $0x250] sm:$0xff] %vm2873_vm1, %v2766_v14  ;;  %v1288_v16 = vpop.f32.mrf.mxu0  ;;  %v1456_v53 = vpop.f32.mrf.mxu2  ;;  %v1099_v14 = vld [vmem:[#allocation3 + $0x1b8] sm:$0xff] }
 0x38f   : > { %2892 = vst.msk [vmem:[%s3690_s12 + $0x90] sm:$0xff] %vm2873_vm1, %v2654_v15  ;;  %v1689_v18 = vpop.f32.mrf.mxu1  ;;  %v1857_v19 = vpop.f32.mrf.mxu3 }
 0x390   : > { %v2263_v21 = vmax.f32 %v1288_v16, %v1689_v18  ;;  %v2319_v26 = vmax.f32 %v1456_v53, %v1857_v19  ;;  %v1156_v18 = vld [vmem:[#allocation3 + $0x380] sm:$0xff] }
 0x391   : > { %1335 = vmatmul.f32.gmra.mxu0 %v1093_v17  ;;  %1736 = vmatmul.f32.gmra.mxu1 %v1093_v17 }
 0x392   : > { %2795 = vmax.xlane.f32.xlu0 %v2319_v26  ;;  %2683 = vmax.xlane.f32.xlu1 %v2263_v21 }
 0x393   : > { %1506 = vmatmul.f32.gmra.mxu2 %v1150_v49  ;;  %1907 = vmatmul.f32.gmra.mxu3 %v1150_v49 }
 0x395   : > { %v2768_v48 = vpop.xlane.xlu1 %2767  ;;  %v2656_v51 = vpop.xlane.xlu2 %2655 }
 0x396   : > { %2949 = vst.msk [vmem:[%s3690_s12 + $0x258] sm:$0xff] %vm2873_vm1, %v2768_v48  ;;  %v1291_v59 = vpop.f32.mrf.mxu0  ;;  %v1459_v52 = vpop.f32.mrf.mxu2  ;;  %v1100_v48 = vld [vmem:[#allocation3 + $0x1c0] sm:$0xff] }
 0x397   : > { %2893 = vst.msk [vmem:[%s3690_s12 + $0x98] sm:$0xff] %vm2873_vm1, %v2656_v51  ;;  %v1692_v54 = vpop.f32.mrf.mxu1  ;;  %v1860_v45 = vpop.f32.mrf.mxu3 }
 0x398   : > { %v2264_v55 = vmax.f32 %v1291_v59, %v1692_v54  ;;  %v2320_v46 = vmax.f32 %v1459_v52, %v1860_v45  ;;  %v1157_v54 = vld [vmem:[#allocation3 + $0x388] sm:$0xff] }
 0x399   : > { %1338 = vmatmul.f32.gmra.mxu0 %v1094_v47  ;;  %1739 = vmatmul.f32.gmra.mxu1 %v1094_v47 }
 0x39a   : > { %2797 = vmax.xlane.f32.xlu1 %v2320_v46  ;;  %2685 = vmax.xlane.f32.xlu2 %v2264_v55 }
 0x39b   : > { %1509 = vmatmul.f32.gmra.mxu2 %v1151_v27  ;;  %1910 = vmatmul.f32.gmra.mxu3 %v1151_v27 }
 0x39d   : > { %v2770_v43 = vpop.xlane.xlu2 %2769  ;;  %v2658_v12 = vpop.xlane.xlu0 %2657 }
 0x39e   : > { %2950 = vst.msk [vmem:[%s3690_s12 + $0x260] sm:$0xff] %vm2873_vm1, %v2770_v43  ;;  %v1294_v57 = vpop.f32.mrf.mxu0  ;;  %v1462_v44 = vpop.f32.mrf.mxu2 }
 0x39f   : > { %2894 = vst.msk [vmem:[%s3690_s12 + $0xa0] sm:$0xff] %vm2873_vm1, %v2658_v12  ;;  %v1695_v41 = vpop.f32.mrf.mxu1  ;;  %v1863_v23 = vpop.f32.mrf.mxu3 }
 0x3a0   : > { %v2265_v42 = vmax.f32 %v1294_v57, %v1695_v41  ;;  %v2321_v60 = vmax.f32 %v1462_v44, %v1863_v23 }
 0x3a1   : > { %1341 = vmatmul.f32.gmra.mxu0 %v1095_v58  ;;  %1742 = vmatmul.f32.gmra.mxu1 %v1095_v58  ;;  %v1158_v58 = vld [vmem:[#allocation3 + $0x390] sm:$0xff] }
 0x3a2   : > { %2799 = vmax.xlane.f32.xlu2 %v2321_v60  ;;  %2687 = vmax.xlane.f32.xlu0 %v2265_v42 }
 0x3a3   : > { %1512 = vmatmul.f32.gmra.mxu2 %v1152_v38  ;;  %1913 = vmatmul.f32.gmra.mxu3 %v1152_v38 }
 0x3a5   : > { %v2772_v61 = vpop.xlane.xlu0 %2771  ;;  %v2660_v62 = vpop.xlane.xlu1 %2659 }
 0x3a6   : > { %2951 = vst.msk [vmem:[%s3690_s12 + $0x268] sm:$0xff] %vm2873_vm1, %v2772_v61  ;;  %v1297_v40 = vpop.f32.mrf.mxu0  ;;  %v1465_v34 = vpop.f32.mrf.mxu2 }
 0x3a7   : > { %2895 = vst.msk [vmem:[%s3690_s12 + $0xa8] sm:$0xff] %vm2873_vm1, %v2660_v62  ;;  %v1698_v63 = vpop.f32.mrf.mxu1  ;;  %v1866_v36 = vpop.f32.mrf.mxu3 }
 0x3a8   : > { %v2266_v35 = vmax.f32 %v1297_v40, %v1698_v63  ;;  %v2322_v31 = vmax.f32 %v1465_v34, %v1866_v36  ;;  %v1159_v34 = vld [vmem:[#allocation3 + $0x398] sm:$0xff] }
 0x3a9   : > { %1344 = vmatmul.f32.gmra.mxu0 %v1096_v33  ;;  %1745 = vmatmul.f32.gmra.mxu1 %v1096_v33 }
 0x3aa   : > { %2801 = vmax.xlane.f32.xlu0 %v2322_v31  ;;  %2689 = vmax.xlane.f32.xlu1 %v2266_v35 }
 0x3ab   : > { %1515 = vmatmul.f32.gmra.mxu2 %v1153_v0  ;;  %1916 = vmatmul.f32.gmra.mxu3 %v1153_v0 }
 0x3ad   : > { %v2774_v1 = vpop.xlane.xlu1 %2773  ;;  %v2662_v32 = vpop.xlane.xlu2 %2661 }
 0x3ae   : > { %2952 = vst.msk [vmem:[%s3690_s12 + $0x270] sm:$0xff] %vm2873_vm1, %v2774_v1  ;;  %v1300_v2 = vpop.f32.mrf.mxu0  ;;  %v1468_v29 = vpop.f32.mrf.mxu2 }
 0x3af   : > { %2896 = vst.msk [vmem:[%s3690_s12 + $0xb0] sm:$0xff] %vm2873_vm1, %v2662_v32  ;;  %v1701_v50 = vpop.f32.mrf.mxu1  ;;  %v1869_v30 = vpop.f32.mrf.mxu3 }
 0x3b0   : > { %v2267_v37 = vmax.f32 %v1300_v2, %v1701_v50  ;;  %v2323_v25 = vmax.f32 %v1468_v29, %v1869_v30  ;;  %v1160_v2 = vld [vmem:[#allocation3 + $0x3a0] sm:$0xff] }
 0x3b1   : > { %1347 = vmatmul.f32.gmra.mxu0 %v1097_v3  ;;  %1748 = vmatmul.f32.gmra.mxu1 %v1097_v3 }
 0x3b2   : > { %2803 = vmax.xlane.f32.xlu1 %v2323_v25  ;;  %2691 = vmax.xlane.f32.xlu2 %v2267_v37 }
 0x3b3   : > { %1518 = vmatmul.f32.gmra.mxu2 %v1154_v39  ;;  %1919 = vmatmul.f32.gmra.mxu3 %v1154_v39 }
 0x3b5   : > { %v2776_v28 = vpop.xlane.xlu2 %2775  ;;  %v2664_v4 = vpop.xlane.xlu0 %2663 }
 0x3b6   : > { %2953 = vst.msk [vmem:[%s3690_s12 + $0x278] sm:$0xff] %vm2873_vm1, %v2776_v28  ;;  %v1303_v56 = vpop.f32.mrf.mxu0  ;;  %v1471_v5 = vpop.f32.mrf.mxu2 }
 0x3b7   : > { %2897 = vst.msk [vmem:[%s3690_s12 + $0xb8] sm:$0xff] %vm2873_vm1, %v2664_v4  ;;  %v1704_v20 = vpop.f32.mrf.mxu1  ;;  %v1872_v6 = vpop.f32.mrf.mxu3  ;;  %v1161_v4 = vld [vmem:[#allocation3 + $0x3a8] sm:$0xff] }
 0x3b8   : > { %v2268_v7 = vmax.f32 %v1303_v56, %v1704_v20  ;;  %v2324_v22 = vmax.f32 %v1471_v5, %v1872_v6 }
 0x3b9   : > { %1350 = vmatmul.f32.gmra.mxu0 %v1098_v24  ;;  %1751 = vmatmul.f32.gmra.mxu1 %v1098_v24 }
 0x3ba   : > { %2805 = vmax.xlane.f32.xlu2 %v2324_v22  ;;  %2693 = vmax.xlane.f32.xlu0 %v2268_v7 }
 0x3bb   : > { %1521 = vmatmul.f32.gmra.mxu2 %v1155_v8  ;;  %1922 = vmatmul.f32.gmra.mxu3 %v1155_v8 }
 0x3bd   : > { %v2778_v9 = vpop.xlane.xlu0 %2777  ;;  %v2666_v10 = vpop.xlane.xlu1 %2665 }
 0x3be   : > { %2954 = vst.msk [vmem:[%s3690_s12 + $0x280] sm:$0xff] %vm2873_vm1, %v2778_v9  ;;  %v1306_v11 = vpop.f32.mrf.mxu0  ;;  %v1474_v13 = vpop.f32.mrf.mxu2  ;;  %v1162_v9 = vld [vmem:[#allocation3 + $0x3b0] sm:$0xff] }
 0x3bf   : > { %2898 = vst.msk [vmem:[%s3690_s12 + $0xc0] sm:$0xff] %vm2873_vm1, %v2666_v10  ;;  %v1707_v15 = vpop.f32.mrf.mxu1  ;;  %v1875_v16 = vpop.f32.mrf.mxu3 }
 0x3c0   : > { %v2269_v53 = vmax.f32 %v1306_v11, %v1707_v15  ;;  %v2325_v17 = vmax.f32 %v1474_v13, %v1875_v16 }
 0x3c1   : > { %1353 = vmatmul.f32.gmra.mxu0 %v1099_v14  ;;  %1754 = vmatmul.f32.gmra.mxu1 %v1099_v14 }
 0x3c2   : > { %2807 = vmax.xlane.f32.xlu0 %v2325_v17  ;;  %2695 = vmax.xlane.f32.xlu1 %v2269_v53 }
 0x3c3   : > { %1524 = vmatmul.f32.gmra.mxu2 %v1156_v18  ;;  %1925 = vmatmul.f32.gmra.mxu3 %v1156_v18  ;;  %v1163_v18 = vld [vmem:[#allocation3 + $0x3b8] sm:$0xff] }
 0x3c5   : > { %v2780_v19 = vpop.xlane.xlu1 %2779  ;;  %v2668_v21 = vpop.xlane.xlu2 %2667 }
 0x3c6   : > { %2955 = vst.msk [vmem:[%s3690_s12 + $0x288] sm:$0xff] %vm2873_vm1, %v2780_v19  ;;  %v1309_v26 = vpop.f32.mrf.mxu0  ;;  %v1477_v49 = vpop.f32.mrf.mxu2 }
 0x3c7   : > { %2899 = vst.msk [vmem:[%s3690_s12 + $0xc8] sm:$0xff] %vm2873_vm1, %v2668_v21  ;;  %v1710_v51 = vpop.f32.mrf.mxu1  ;;  %v1878_v59 = vpop.f32.mrf.mxu3 }
 0x3c8   : > { %v2270_v52 = vmax.f32 %v1309_v26, %v1710_v51  ;;  %v2326_v47 = vmax.f32 %v1477_v49, %v1878_v59 }
 0x3c9   : > { %1356 = vmatmul.f32.gmra.mxu0 %v1100_v48  ;;  %1757 = vmatmul.f32.gmra.mxu1 %v1100_v48 }
 0x3ca   : > { %2809 = vmax.xlane.f32.xlu1 %v2326_v47  ;;  %2697 = vmax.xlane.f32.xlu2 %v2270_v52  ;;  %v1164_v47 = vld [vmem:[#allocation3 + $0x3c0] sm:$0xff] }
 0x3cb   : > { %1527 = vmatmul.f32.gmra.mxu2 %v1157_v54  ;;  %1928 = vmatmul.f32.gmra.mxu3 %v1157_v54 }
 0x3cd   : > { %v2782_v45 = vpop.xlane.xlu2 %2781  ;;  %v2670_v55 = vpop.xlane.xlu0 %2669 }
 0x3ce   : > { %2956 = vst.msk [vmem:[%s3690_s12 + $0x290] sm:$0xff] %vm2873_vm1, %v2782_v45  ;;  %v1312_v46 = vpop.f32.mrf.mxu0  ;;  %v1480_v27 = vpop.f32.mrf.mxu2 }
 0x3cf   : > { %2900 = vst.msk [vmem:[%s3690_s12 + $0xd0] sm:$0xff] %vm2873_vm1, %v2670_v55  ;;  %v1713_v43 = vpop.f32.mrf.mxu1  ;;  %v1881_v12 = vpop.f32.mrf.mxu3 }
 0x3d0   : > { %v2271_v57 = vmax.f32 %v1312_v46, %v1713_v43  ;;  %v2327_v44 = vmax.f32 %v1480_v27, %v1881_v12 }
 0x3d2   : > { %2811 = vmax.xlane.f32.xlu2 %v2327_v44  ;;  %2699 = vmax.xlane.f32.xlu0 %v2271_v57  ;;  %v1165_v44 = vld [vmem:[#allocation3 + $0x3c8] sm:$0xff] }
 0x3d3   : > { %1530 = vmatmul.f32.gmra.mxu2 %v1158_v58  ;;  %1931 = vmatmul.f32.gmra.mxu3 %v1158_v58 }
 0x3d5   : > { %v2784_v41 = vpop.xlane.xlu0 %2783  ;;  %v2672_v23 = vpop.xlane.xlu1 %2671 }
 0x3d6   : > { %2957 = vst.msk [vmem:[%s3690_s12 + $0x298] sm:$0xff] %vm2873_vm1, %v2784_v41  ;;  %v1315_v42 = vpop.f32.mrf.mxu0  ;;  %v1483_v60 = vpop.f32.mrf.mxu2 }
 0x3d7   : > { %2901 = vst.msk [vmem:[%s3690_s12 + $0xd8] sm:$0xff] %vm2873_vm1, %v2672_v23  ;;  %v1716_v38 = vpop.f32.mrf.mxu1  ;;  %v1884_v61 = vpop.f32.mrf.mxu3 }
 0x3d8   : > { %v2272_v62 = vmax.f32 %v1315_v42, %v1716_v38  ;;  %v2328_v40 = vmax.f32 %v1483_v60, %v1884_v61 }
 0x3da   : > { %2813 = vmax.xlane.f32.xlu0 %v2328_v40  ;;  %2701 = vmax.xlane.f32.xlu1 %v2272_v62  ;;  %v1166_v40 = vld [vmem:[#allocation3 + $0x3d0] sm:$0xff] }
 0x3db   : > { %1533 = vmatmul.f32.gmra.mxu2 %v1159_v34  ;;  %1934 = vmatmul.f32.gmra.mxu3 %v1159_v34 }
 0x3dd   : > { %v2786_v33 = vpop.xlane.xlu1 %2785  ;;  %v2674_v63 = vpop.xlane.xlu2 %2673 }
 0x3de   : > { %2958 = vst.msk [vmem:[%s3690_s12 + $0x2a0] sm:$0xff] %vm2873_vm1, %v2786_v33  ;;  %v1318_v36 = vpop.f32.mrf.mxu0  ;;  %v1486_v35 = vpop.f32.mrf.mxu2 }
 0x3df   : > { %2902 = vst.msk [vmem:[%s3690_s12 + $0xe0] sm:$0xff] %vm2873_vm1, %v2674_v63  ;;  %v1719_v31 = vpop.f32.mrf.mxu1  ;;  %v1887_v0 = vpop.f32.mrf.mxu3 }
 0x3e0   : > { %v2273_v1 = vmax.f32 %v1318_v36, %v1719_v31  ;;  %v2329_v32 = vmax.f32 %v1486_v35, %v1887_v0 }
 0x3e2   : > { %2815 = vmax.xlane.f32.xlu1 %v2329_v32  ;;  %2703 = vmax.xlane.f32.xlu2 %v2273_v1  ;;  %v1167_v32 = vld [vmem:[#allocation3 + $0x3d8] sm:$0xff] }
 0x3e3   : > { %1536 = vmatmul.f32.gmra.mxu2 %v1160_v2  ;;  %1937 = vmatmul.f32.gmra.mxu3 %v1160_v2 }
 0x3e5   : > { %v2788_v29 = vpop.xlane.xlu2 %2787  ;;  %v2676_v3 = vpop.xlane.xlu0 %2675 }
 0x3e6   : > { %2959 = vst.msk [vmem:[%s3690_s12 + $0x2a8] sm:$0xff] %vm2873_vm1, %v2788_v29  ;;  %v1321_v50 = vpop.f32.mrf.mxu0  ;;  %v1489_v30 = vpop.f32.mrf.mxu2 }
 0x3e7   : > { %2903 = vst.msk [vmem:[%s3690_s12 + $0xe8] sm:$0xff] %vm2873_vm1, %v2676_v3  ;;  %v1722_v37 = vpop.f32.mrf.mxu1  ;;  %v1890_v25 = vpop.f32.mrf.mxu3 }
 0x3e8   : > { %v2274_v39 = vmax.f32 %v1321_v50, %v1722_v37  ;;  %v2330_v28 = vmax.f32 %v1489_v30, %v1890_v25 }
 0x3ea   : > { %2817 = vmax.xlane.f32.xlu2 %v2330_v28  ;;  %2705 = vmax.xlane.f32.xlu0 %v2274_v39  ;;  %v1168_v28 = vld [vmem:[#allocation3 + $0x3e0] sm:$0xff] }
 0x3eb   : > { %1539 = vmatmul.f32.gmra.mxu2 %v1161_v4  ;;  %1940 = vmatmul.f32.gmra.mxu3 %v1161_v4 }
 0x3ed   : > { %v2790_v56 = vpop.xlane.xlu0 %2789  ;;  %v2678_v5 = vpop.xlane.xlu1 %2677 }
 0x3ee   : > { %2960 = vst.msk [vmem:[%s3690_s12 + $0x2b0] sm:$0xff] %vm2873_vm1, %v2790_v56  ;;  %v1324_v24 = vpop.f32.mrf.mxu0  ;;  %v1492_v20 = vpop.f32.mrf.mxu2 }
 0x3ef   : > { %2904 = vst.msk [vmem:[%s3690_s12 + $0xf0] sm:$0xff] %vm2873_vm1, %v2678_v5  ;;  %v1725_v6 = vpop.f32.mrf.mxu1  ;;  %v1893_v7 = vpop.f32.mrf.mxu3 }
 0x3f0   : > { %v2275_v22 = vmax.f32 %v1324_v24, %v1725_v6  ;;  %v2331_v8 = vmax.f32 %v1492_v20, %v1893_v7 }
 0x3f2   : > { %2819 = vmax.xlane.f32.xlu0 %v2331_v8  ;;  %2707 = vmax.xlane.f32.xlu1 %v2275_v22  ;;  %v1169_v8 = vld [vmem:[#allocation3 + $0x3e8] sm:$0xff] }
 0x3f3   : > { %1542 = vmatmul.f32.gmra.mxu2 %v1162_v9  ;;  %1943 = vmatmul.f32.gmra.mxu3 %v1162_v9 }
 0x3f5   : > { %v2792_v10 = vpop.xlane.xlu1 %2791  ;;  %v2680_v11 = vpop.xlane.xlu2 %2679 }
 0x3f6   : > { %2961 = vst.msk [vmem:[%s3690_s12 + $0x2b8] sm:$0xff] %vm2873_vm1, %v2792_v10  ;;  %v1327_v13 = vpop.f32.mrf.mxu0  ;;  %v1495_v14 = vpop.f32.mrf.mxu2 }
 0x3f7   : > { %2905 = vst.msk [vmem:[%s3690_s12 + $0xf8] sm:$0xff] %vm2873_vm1, %v2680_v11  ;;  %v1728_v15 = vpop.f32.mrf.mxu1  ;;  %v1896_v16 = vpop.f32.mrf.mxu3 }
 0x3f8   : > { %v2276_v53 = vmax.f32 %v1327_v13, %v1728_v15  ;;  %v2332_v17 = vmax.f32 %v1495_v14, %v1896_v16 }
 0x3fa   : > { %2821 = vmax.xlane.f32.xlu1 %v2332_v17  ;;  %2709 = vmax.xlane.f32.xlu2 %v2276_v53  ;;  %v1170_v17 = vld [vmem:[#allocation3 + $0x3f0] sm:$0xff] }
 0x3fb   : > { %1545 = vmatmul.f32.gmra.mxu2 %v1163_v18  ;;  %1946 = vmatmul.f32.gmra.mxu3 %v1163_v18 }
 0x3fd   : > { %v2794_v19 = vpop.xlane.xlu2 %2793  ;;  %v2682_v21 = vpop.xlane.xlu0 %2681 }
 0x3fe   : > { %2962 = vst.msk [vmem:[%s3690_s12 + $0x2c0] sm:$0xff] %vm2873_vm1, %v2794_v19  ;;  %v1330_v26 = vpop.f32.mrf.mxu0  ;;  %v1498_v49 = vpop.f32.mrf.mxu2 }
 0x3ff   : > { %2906 = vst.msk [vmem:[%s3690_s12 + $0x100] sm:$0xff] %vm2873_vm1, %v2682_v21  ;;  %v1731_v48 = vpop.f32.mrf.mxu1  ;;  %v1899_v51 = vpop.f32.mrf.mxu3 }
 0x400   : > { %v2277_v59 = vmax.f32 %v1330_v26, %v1731_v48  ;;  %v2333_v52 = vmax.f32 %v1498_v49, %v1899_v51 }
 0x402   : > { %2823 = vmax.xlane.f32.xlu2 %v2333_v52  ;;  %2711 = vmax.xlane.f32.xlu0 %v2277_v59  ;;  %v1171_v52 = vld [vmem:[#allocation3 + $0x3f8] sm:$0xff] }
 0x403   : > { %1548 = vmatmul.f32.gmra.mxu2 %v1164_v47  ;;  %1949 = vmatmul.f32.gmra.mxu3 %v1164_v47 }
 0x405   : > { %v2796_v54 = vpop.xlane.xlu0 %2795  ;;  %v2684_v45 = vpop.xlane.xlu1 %2683 }
 0x406   : > { %2963 = vst.msk [vmem:[%s3690_s12 + $0x2c8] sm:$0xff] %vm2873_vm1, %v2796_v54  ;;  %v1333_v55 = vpop.f32.mrf.mxu0  ;;  %v1501_v46 = vpop.f32.mrf.mxu2 }
 0x407   : > { %2907 = vst.msk [vmem:[%s3690_s12 + $0x108] sm:$0xff] %vm2873_vm1, %v2684_v45  ;;  %v1734_v27 = vpop.f32.mrf.mxu1  ;;  %v1902_v43 = vpop.f32.mrf.mxu3 }
 0x408   : > { %v2278_v12 = vmax.f32 %v1333_v55, %v1734_v27  ;;  %v2334_v57 = vmax.f32 %v1501_v46, %v1902_v43 }
 0x40a   : > { %2825 = vmax.xlane.f32.xlu0 %v2334_v57  ;;  %2713 = vmax.xlane.f32.xlu1 %v2278_v12 }
 0x40b   : > { %1551 = vmatmul.f32.gmra.mxu2 %v1165_v44  ;;  %1952 = vmatmul.f32.gmra.mxu3 %v1165_v44 }
 0x40d   : > { %v2798_v58 = vpop.xlane.xlu1 %2797  ;;  %v2686_v41 = vpop.xlane.xlu2 %2685 }
 0x40e   : > { %2964 = vst.msk [vmem:[%s3690_s12 + $0x2d0] sm:$0xff] %vm2873_vm1, %v2798_v58  ;;  %v1336_v23 = vpop.f32.mrf.mxu0  ;;  %v1504_v42 = vpop.f32.mrf.mxu2 }
 0x40f   : > { %2908 = vst.msk [vmem:[%s3690_s12 + $0x110] sm:$0xff] %vm2873_vm1, %v2686_v41  ;;  %v1737_v60 = vpop.f32.mrf.mxu1  ;;  %v1905_v38 = vpop.f32.mrf.mxu3 }
 0x410   : > { %v2279_v61 = vmax.f32 %v1336_v23, %v1737_v60  ;;  %v2335_v62 = vmax.f32 %v1504_v42, %v1905_v38 }
 0x412   : > { %2827 = vmax.xlane.f32.xlu1 %v2335_v62  ;;  %2715 = vmax.xlane.f32.xlu2 %v2279_v61 }
 0x413   : > { %1554 = vmatmul.f32.gmra.mxu2 %v1166_v40  ;;  %1955 = vmatmul.f32.gmra.mxu3 %v1166_v40 }
 0x415   : > { %v2800_v34 = vpop.xlane.xlu2 %2799  ;;  %v2688_v33 = vpop.xlane.xlu0 %2687 }
 0x416   : > { %2965 = vst.msk [vmem:[%s3690_s12 + $0x2d8] sm:$0xff] %vm2873_vm1, %v2800_v34  ;;  %v1339_v63 = vpop.f32.mrf.mxu0  ;;  %v1507_v36 = vpop.f32.mrf.mxu2 }
 0x417   : > { %2909 = vst.msk [vmem:[%s3690_s12 + $0x118] sm:$0xff] %vm2873_vm1, %v2688_v33  ;;  %v1740_v35 = vpop.f32.mrf.mxu1  ;;  %v1908_v31 = vpop.f32.mrf.mxu3 }
 0x418   : > { %v2280_v0 = vmax.f32 %v1339_v63, %v1740_v35  ;;  %v2336_v1 = vmax.f32 %v1507_v36, %v1908_v31 }
 0x41a   : > { %2829 = vmax.xlane.f32.xlu2 %v2336_v1  ;;  %2717 = vmax.xlane.f32.xlu0 %v2280_v0 }
 0x41b   : > { %1557 = vmatmul.f32.gmra.mxu2 %v1167_v32  ;;  %1958 = vmatmul.f32.gmra.mxu3 %v1167_v32 }
 0x41d   : > { %v2802_v2 = vpop.xlane.xlu0 %2801  ;;  %v2690_v29 = vpop.xlane.xlu1 %2689 }
 0x41e   : > { %2966 = vst.msk [vmem:[%s3690_s12 + $0x2e0] sm:$0xff] %vm2873_vm1, %v2802_v2  ;;  %v1342_v3 = vpop.f32.mrf.mxu0  ;;  %v1510_v50 = vpop.f32.mrf.mxu2 }
 0x41f   : > { %2910 = vst.msk [vmem:[%s3690_s12 + $0x120] sm:$0xff] %vm2873_vm1, %v2690_v29  ;;  %v1743_v30 = vpop.f32.mrf.mxu1  ;;  %v1911_v37 = vpop.f32.mrf.mxu3 }
 0x420   : > { %v2281_v25 = vmax.f32 %v1342_v3, %v1743_v30  ;;  %v2337_v39 = vmax.f32 %v1510_v50, %v1911_v37 }
 0x422   : > { %2831 = vmax.xlane.f32.xlu0 %v2337_v39  ;;  %2719 = vmax.xlane.f32.xlu1 %v2281_v25 }
 0x423   : > { %1560 = vmatmul.f32.gmra.mxu2 %v1168_v28  ;;  %1961 = vmatmul.f32.gmra.mxu3 %v1168_v28 }
 0x425   : > { %v2804_v4 = vpop.xlane.xlu1 %2803  ;;  %v2692_v56 = vpop.xlane.xlu2 %2691 }
 0x426   : > { %2967 = vst.msk [vmem:[%s3690_s12 + $0x2e8] sm:$0xff] %vm2873_vm1, %v2804_v4  ;;  %v1345_v5 = vpop.f32.mrf.mxu0  ;;  %v1513_v24 = vpop.f32.mrf.mxu2 }
 0x427   : > { %2911 = vst.msk [vmem:[%s3690_s12 + $0x128] sm:$0xff] %vm2873_vm1, %v2692_v56  ;;  %v1746_v20 = vpop.f32.mrf.mxu1  ;;  %v1914_v6 = vpop.f32.mrf.mxu3 }
 0x428   : > { %v2282_v7 = vmax.f32 %v1345_v5, %v1746_v20  ;;  %v2338_v22 = vmax.f32 %v1513_v24, %v1914_v6 }
 0x42a   : > { %2833 = vmax.xlane.f32.xlu1 %v2338_v22  ;;  %2721 = vmax.xlane.f32.xlu2 %v2282_v7 }
 0x42b   : > { %1563 = vmatmul.f32.gmra.mxu2 %v1169_v8  ;;  %1964 = vmatmul.f32.gmra.mxu3 %v1169_v8 }
 0x42d   : > { %v2806_v9 = vpop.xlane.xlu2 %2805  ;;  %v2694_v10 = vpop.xlane.xlu0 %2693 }
 0x42e   : > { %2968 = vst.msk [vmem:[%s3690_s12 + $0x2f0] sm:$0xff] %vm2873_vm1, %v2806_v9  ;;  %v1348_v11 = vpop.f32.mrf.mxu0  ;;  %v1516_v13 = vpop.f32.mrf.mxu2 }
 0x42f   : > { %2912 = vst.msk [vmem:[%s3690_s12 + $0x130] sm:$0xff] %vm2873_vm1, %v2694_v10  ;;  %v1749_v14 = vpop.f32.mrf.mxu1  ;;  %v1917_v15 = vpop.f32.mrf.mxu3 }
 0x430   : > { %v2283_v16 = vmax.f32 %v1348_v11, %v1749_v14  ;;  %v2339_v53 = vmax.f32 %v1516_v13, %v1917_v15 }
 0x432   : > { %2835 = vmax.xlane.f32.xlu2 %v2339_v53  ;;  %2723 = vmax.xlane.f32.xlu0 %v2283_v16 }
 0x433   : > { %1566 = vmatmul.f32.gmra.mxu2 %v1170_v17  ;;  %1967 = vmatmul.f32.gmra.mxu3 %v1170_v17 }
 0x435   : > { %v2808_v18 = vpop.xlane.xlu0 %2807  ;;  %v2696_v19 = vpop.xlane.xlu1 %2695 }
 0x436   : > { %2969 = vst.msk [vmem:[%s3690_s12 + $0x2f8] sm:$0xff] %vm2873_vm1, %v2808_v18  ;;  %v1351_v21 = vpop.f32.mrf.mxu0  ;;  %v1519_v26 = vpop.f32.mrf.mxu2 }
 0x437   : > { %2913 = vst.msk [vmem:[%s3690_s12 + $0x138] sm:$0xff] %vm2873_vm1, %v2696_v19  ;;  %v1752_v49 = vpop.f32.mrf.mxu1  ;;  %v1920_v48 = vpop.f32.mrf.mxu3 }
 0x438   : > { %v2284_v51 = vmax.f32 %v1351_v21, %v1752_v49  ;;  %v2340_v59 = vmax.f32 %v1519_v26, %v1920_v48 }
 0x43a   : > { %2837 = vmax.xlane.f32.xlu0 %v2340_v59  ;;  %2725 = vmax.xlane.f32.xlu1 %v2284_v51 }
 0x43b   : > { %1569 = vmatmul.f32.gmra.mxu2 %v1171_v52  ;;  %1970 = vmatmul.f32.gmra.mxu3 %v1171_v52 }
 0x43d   : > { %v2810_v47 = vpop.xlane.xlu1 %2809  ;;  %v2698_v54 = vpop.xlane.xlu2 %2697 }
 0x43e   : > { %2970 = vst.msk [vmem:[%s3690_s12 + $0x300] sm:$0xff] %vm2873_vm1, %v2810_v47  ;;  %v1354_v45 = vpop.f32.mrf.mxu0  ;;  %v1522_v55 = vpop.f32.mrf.mxu2 }
 0x43f   : > { %2914 = vst.msk [vmem:[%s3690_s12 + $0x140] sm:$0xff] %vm2873_vm1, %v2698_v54  ;;  %v1755_v46 = vpop.f32.mrf.mxu1  ;;  %v1923_v27 = vpop.f32.mrf.mxu3 }
 0x440   : > { %v2285_v43 = vmax.f32 %v1354_v45, %v1755_v46  ;;  %v2341_v12 = vmax.f32 %v1522_v55, %v1923_v27 }
 0x442   : > { %2839 = vmax.xlane.f32.xlu1 %v2341_v12  ;;  %2727 = vmax.xlane.f32.xlu2 %v2285_v43 }
 0x445   : > { %v2812_v57 = vpop.xlane.xlu2 %2811  ;;  %v2700_v44 = vpop.xlane.xlu0 %2699 }
 0x446   : > { %2971 = vst.msk [vmem:[%s3690_s12 + $0x308] sm:$0xff] %vm2873_vm1, %v2812_v57  ;;  %v1357_v58 = vpop.f32.mrf.mxu0  ;;  %v1525_v41 = vpop.f32.mrf.mxu2 }
 0x447   : > { %2915 = vst.msk [vmem:[%s3690_s12 + $0x148] sm:$0xff] %vm2873_vm1, %v2700_v44  ;;  %v1758_v23 = vpop.f32.mrf.mxu1  ;;  %v1926_v42 = vpop.f32.mrf.mxu3 }
 0x448   : > { %v2286_v60 = vmax.f32 %v1357_v58, %v1758_v23  ;;  %v2342_v38 = vmax.f32 %v1525_v41, %v1926_v42 }
 0x44a   : > { %2841 = vmax.xlane.f32.xlu2 %v2342_v38  ;;  %2729 = vmax.xlane.f32.xlu0 %v2286_v60 }
 0x44d   : > { %v2814_v61 = vpop.xlane.xlu0 %2813  ;;  %v2702_v62 = vpop.xlane.xlu1 %2701 }
 0x44e   : > { %2972 = vst.msk [vmem:[%s3690_s12 + $0x310] sm:$0xff] %vm2873_vm1, %v2814_v61  ;;  %v1528_v40 = vpop.f32.mrf.mxu2 }
 0x44f   : > { %2916 = vst.msk [vmem:[%s3690_s12 + $0x150] sm:$0xff] %vm2873_vm1, %v2702_v62  ;;  %v1929_v34 = vpop.f32.mrf.mxu3 }
 0x450   : > { %v2343_v33 = vmax.f32 %v1528_v40, %v1929_v34 }
 0x452   : > { %2843 = vmax.xlane.f32.xlu0 %v2343_v33 }
 0x455   : > { %v2816_v63 = vpop.xlane.xlu1 %2815  ;;  %v2704_v36 = vpop.xlane.xlu2 %2703 }
 0x456   : > { %2973 = vst.msk [vmem:[%s3690_s12 + $0x318] sm:$0xff] %vm2873_vm1, %v2816_v63  ;;  %v1531_v35 = vpop.f32.mrf.mxu2 }
 0x457   : > { %2917 = vst.msk [vmem:[%s3690_s12 + $0x158] sm:$0xff] %vm2873_vm1, %v2704_v36  ;;  %v1932_v31 = vpop.f32.mrf.mxu3 }
 0x458   : > { %v2344_v0 = vmax.f32 %v1531_v35, %v1932_v31 }
 0x45a   : > { %2845 = vmax.xlane.f32.xlu1 %v2344_v0 }
 0x45d   : > { %v2818_v1 = vpop.xlane.xlu2 %2817  ;;  %v2706_v32 = vpop.xlane.xlu0 %2705 }
 0x45e   : > { %2974 = vst.msk [vmem:[%s3690_s12 + $0x320] sm:$0xff] %vm2873_vm1, %v2818_v1  ;;  %v1534_v2 = vpop.f32.mrf.mxu2 }
 0x45f   : > { %2918 = vst.msk [vmem:[%s3690_s12 + $0x160] sm:$0xff] %vm2873_vm1, %v2706_v32  ;;  %v1935_v29 = vpop.f32.mrf.mxu3 }
 0x460   : > { %v2345_v3 = vmax.f32 %v1534_v2, %v1935_v29 }
 0x462   : > { %2847 = vmax.xlane.f32.xlu2 %v2345_v3 }
 0x465   : > { %v2820_v50 = vpop.xlane.xlu0 %2819  ;;  %v2708_v30 = vpop.xlane.xlu1 %2707 }
 0x466   : > { %2975 = vst.msk [vmem:[%s3690_s12 + $0x328] sm:$0xff] %vm2873_vm1, %v2820_v50  ;;  %v1537_v37 = vpop.f32.mrf.mxu2 }
 0x467   : > { %2919 = vst.msk [vmem:[%s3690_s12 + $0x168] sm:$0xff] %vm2873_vm1, %v2708_v30  ;;  %v1938_v25 = vpop.f32.mrf.mxu3 }
 0x468   : > { %v2346_v39 = vmax.f32 %v1537_v37, %v1938_v25 }
 0x46a   : > { %2849 = vmax.xlane.f32.xlu0 %v2346_v39 }
 0x46d   : > { %v2822_v28 = vpop.xlane.xlu1 %2821  ;;  %v2710_v4 = vpop.xlane.xlu2 %2709 }
 0x46e   : > { %2976 = vst.msk [vmem:[%s3690_s12 + $0x330] sm:$0xff] %vm2873_vm1, %v2822_v28  ;;  %v1540_v56 = vpop.f32.mrf.mxu2 }
 0x46f   : > { %2920 = vst.msk [vmem:[%s3690_s12 + $0x170] sm:$0xff] %vm2873_vm1, %v2710_v4  ;;  %v1941_v5 = vpop.f32.mrf.mxu3 }
 0x470   : > { %v2347_v24 = vmax.f32 %v1540_v56, %v1941_v5 }
 0x472   : > { %2851 = vmax.xlane.f32.xlu1 %v2347_v24 }
 0x475   : > { %v2824_v20 = vpop.xlane.xlu2 %2823  ;;  %v2712_v6 = vpop.xlane.xlu0 %2711 }
 0x476   : > { %2977 = vst.msk [vmem:[%s3690_s12 + $0x338] sm:$0xff] %vm2873_vm1, %v2824_v20  ;;  %v1543_v7 = vpop.f32.mrf.mxu2 }
 0x477   : > { %2921 = vst.msk [vmem:[%s3690_s12 + $0x178] sm:$0xff] %vm2873_vm1, %v2712_v6  ;;  %v1944_v22 = vpop.f32.mrf.mxu3 }
 0x478   : > { %v2348_v8 = vmax.f32 %v1543_v7, %v1944_v22 }
 0x47a   : > { %2853 = vmax.xlane.f32.xlu2 %v2348_v8 }
 0x47d   : > { %v2826_v9 = vpop.xlane.xlu0 %2825  ;;  %v2714_v10 = vpop.xlane.xlu1 %2713 }
 0x47e   : > { %2978 = vst.msk [vmem:[%s3690_s12 + $0x340] sm:$0xff] %vm2873_vm1, %v2826_v9  ;;  %v1546_v11 = vpop.f32.mrf.mxu2 }
 0x47f   : > { %2922 = vst.msk [vmem:[%s3690_s12 + $0x180] sm:$0xff] %vm2873_vm1, %v2714_v10  ;;  %v1947_v13 = vpop.f32.mrf.mxu3 }
 0x480   : > { %v2349_v14 = vmax.f32 %v1546_v11, %v1947_v13 }
 0x482   : > { %2855 = vmax.xlane.f32.xlu0 %v2349_v14 }
 0x485   : > { %v2828_v15 = vpop.xlane.xlu1 %2827  ;;  %v2716_v16 = vpop.xlane.xlu2 %2715 }
 0x486   : > { %2979 = vst.msk [vmem:[%s3690_s12 + $0x348] sm:$0xff] %vm2873_vm1, %v2828_v15  ;;  %v1549_v53 = vpop.f32.mrf.mxu2 }
 0x487   : > { %2923 = vst.msk [vmem:[%s3690_s12 + $0x188] sm:$0xff] %vm2873_vm1, %v2716_v16  ;;  %v1950_v17 = vpop.f32.mrf.mxu3 }
 0x488   : > { %v2350_v18 = vmax.f32 %v1549_v53, %v1950_v17 }
 0x48a   : > { %2857 = vmax.xlane.f32.xlu1 %v2350_v18 }
 0x48d   : > { %v2830_v19 = vpop.xlane.xlu2 %2829  ;;  %v2718_v21 = vpop.xlane.xlu0 %2717 }
 0x48e   : > { %2980 = vst.msk [vmem:[%s3690_s12 + $0x350] sm:$0xff] %vm2873_vm1, %v2830_v19  ;;  %v1552_v26 = vpop.f32.mrf.mxu2 }
 0x48f   : > { %2924 = vst.msk [vmem:[%s3690_s12 + $0x190] sm:$0xff] %vm2873_vm1, %v2718_v21  ;;  %v1953_v49 = vpop.f32.mrf.mxu3 }
 0x490   : > { %v2351_v48 = vmax.f32 %v1552_v26, %v1953_v49 }
 0x492   : > { %2859 = vmax.xlane.f32.xlu2 %v2351_v48 }
 0x495   : > { %v2832_v51 = vpop.xlane.xlu0 %2831  ;;  %v2720_v59 = vpop.xlane.xlu1 %2719 }
 0x496   : > { %2981 = vst.msk [vmem:[%s3690_s12 + $0x358] sm:$0xff] %vm2873_vm1, %v2832_v51  ;;  %v1555_v52 = vpop.f32.mrf.mxu2 }
 0x497   : > { %2925 = vst.msk [vmem:[%s3690_s12 + $0x198] sm:$0xff] %vm2873_vm1, %v2720_v59  ;;  %v1956_v47 = vpop.f32.mrf.mxu3 }
 0x498   : > { %v2352_v54 = vmax.f32 %v1555_v52, %v1956_v47 }
 0x49a   : > { %2861 = vmax.xlane.f32.xlu0 %v2352_v54 }
 0x49d   : > { %v2834_v45 = vpop.xlane.xlu1 %2833  ;;  %v2722_v55 = vpop.xlane.xlu2 %2721 }
 0x49e   : > { %2982 = vst.msk [vmem:[%s3690_s12 + $0x360] sm:$0xff] %vm2873_vm1, %v2834_v45  ;;  %v1558_v46 = vpop.f32.mrf.mxu2 }
 0x49f   : > { %2926 = vst.msk [vmem:[%s3690_s12 + $0x1a0] sm:$0xff] %vm2873_vm1, %v2722_v55  ;;  %v1959_v27 = vpop.f32.mrf.mxu3 }
 0x4a0   : > { %v2353_v43 = vmax.f32 %v1558_v46, %v1959_v27 }
 0x4a2   : > { %2863 = vmax.xlane.f32.xlu1 %v2353_v43 }
 0x4a5   : > { %v2836_v12 = vpop.xlane.xlu2 %2835  ;;  %v2724_v57 = vpop.xlane.xlu0 %2723 }
 0x4a6   : > { %2983 = vst.msk [vmem:[%s3690_s12 + $0x368] sm:$0xff] %vm2873_vm1, %v2836_v12  ;;  %v1561_v44 = vpop.f32.mrf.mxu2 }
 0x4a7   : > { %2927 = vst.msk [vmem:[%s3690_s12 + $0x1a8] sm:$0xff] %vm2873_vm1, %v2724_v57  ;;  %v1962_v58 = vpop.f32.mrf.mxu3 }
 0x4a8   : > { %v2354_v41 = vmax.f32 %v1561_v44, %v1962_v58 }
 0x4aa   : > { %2865 = vmax.xlane.f32.xlu2 %v2354_v41 }
 0x4ad   : > { %v2838_v23 = vpop.xlane.xlu0 %2837  ;;  %v2726_v42 = vpop.xlane.xlu1 %2725 }
 0x4ae   : > { %2984 = vst.msk [vmem:[%s3690_s12 + $0x370] sm:$0xff] %vm2873_vm1, %v2838_v23  ;;  %v1564_v60 = vpop.f32.mrf.mxu2 }
 0x4af   : > { %2928 = vst.msk [vmem:[%s3690_s12 + $0x1b0] sm:$0xff] %vm2873_vm1, %v2726_v42  ;;  %v1965_v38 = vpop.f32.mrf.mxu3 }
 0x4b0   : > { %v2355_v61 = vmax.f32 %v1564_v60, %v1965_v38 }
 0x4b2   : > { %2867 = vmax.xlane.f32.xlu0 %v2355_v61 }
 0x4b5   : > { %v2840_v62 = vpop.xlane.xlu1 %2839  ;;  %v2728_v40 = vpop.xlane.xlu2 %2727 }
 0x4b6   : > { %2985 = vst.msk [vmem:[%s3690_s12 + $0x378] sm:$0xff] %vm2873_vm1, %v2840_v62  ;;  %v1567_v34 = vpop.f32.mrf.mxu2 }
 0x4b7   : > { %2929 = vst.msk [vmem:[%s3690_s12 + $0x1b8] sm:$0xff] %vm2873_vm1, %v2728_v40  ;;  %v1968_v33 = vpop.f32.mrf.mxu3 }
 0x4b8   : > { %v2356_v63 = vmax.f32 %v1567_v34, %v1968_v33 }
 0x4ba   : > { %2869 = vmax.xlane.f32.xlu1 %v2356_v63 }
 0x4bd   : > { %v2842_v36 = vpop.xlane.xlu2 %2841  ;;  %v2730_v35 = vpop.xlane.xlu0 %2729 }
 0x4be   : > { %2986 = vst.msk [vmem:[%s3690_s12 + $0x380] sm:$0xff] %vm2873_vm1, %v2842_v36  ;;  %v1570_v31 = vpop.f32.mrf.mxu2 }
 0x4bf   : > { %2930 = vst.msk [vmem:[%s3690_s12 + $0x1c0] sm:$0xff] %vm2873_vm1, %v2730_v35  ;;  %v1971_v0 = vpop.f32.mrf.mxu3 }
 0x4c0   : > { %v2357_v1 = vmax.f32 %v1570_v31, %v1971_v0 }
 0x4c2   : > { %2871 = vmax.xlane.f32.xlu2 %v2357_v1 }
 0x4c5   : > { %v2844_v32 = vpop.xlane.xlu0 %2843 }
 0x4c6   : > { %2987 = vst.msk [vmem:[%s3690_s12 + $0x388] sm:$0xff] %vm2873_vm1, %v2844_v32 }
 0x4cd   : > { %v2846_v2 = vpop.xlane.xlu1 %2845 }
 0x4ce   : > { %2988 = vst.msk [vmem:[%s3690_s12 + $0x390] sm:$0xff] %vm2873_vm1, %v2846_v2 }
 0x4d5   : > { %v2848_v29 = vpop.xlane.xlu2 %2847 }
 0x4d6   : > { %2989 = vst.msk [vmem:[%s3690_s12 + $0x398] sm:$0xff] %vm2873_vm1, %v2848_v29 }
 0x4dd   : > { %v2850_v3 = vpop.xlane.xlu0 %2849 }
 0x4de   : > { %2990 = vst.msk [vmem:[%s3690_s12 + $0x3a0] sm:$0xff] %vm2873_vm1, %v2850_v3 }
 0x4e5   : > { %v2852_v50 = vpop.xlane.xlu1 %2851 }
 0x4e6   : > { %2991 = vst.msk [vmem:[%s3690_s12 + $0x3a8] sm:$0xff] %vm2873_vm1, %v2852_v50 }
 0x4ed   : > { %v2854_v30 = vpop.xlane.xlu2 %2853 }
 0x4ee   : > { %2992 = vst.msk [vmem:[%s3690_s12 + $0x3b0] sm:$0xff] %vm2873_vm1, %v2854_v30 }
 0x4f5   : > { %v2856_v37 = vpop.xlane.xlu0 %2855 }
 0x4f6   : > { %2993 = vst.msk [vmem:[%s3690_s12 + $0x3b8] sm:$0xff] %vm2873_vm1, %v2856_v37 }
 0x4fd   : > { %v2858_v25 = vpop.xlane.xlu1 %2857 }
 0x4fe   : > { %2994 = vst.msk [vmem:[%s3690_s12 + $0x3c0] sm:$0xff] %vm2873_vm1, %v2858_v25 }
 0x505   : > { %v2860_v39 = vpop.xlane.xlu2 %2859 }
 0x506   : > { %2995 = vst.msk [vmem:[%s3690_s12 + $0x3c8] sm:$0xff] %vm2873_vm1, %v2860_v39 }
 0x50d   : > { %v2862_v28 = vpop.xlane.xlu0 %2861 }
 0x50e   : > { %2996 = vst.msk [vmem:[%s3690_s12 + $0x3d0] sm:$0xff] %vm2873_vm1, %v2862_v28 }
 0x515   : > { %v2864_v4 = vpop.xlane.xlu1 %2863 }
 0x516   : > { %2997 = vst.msk [vmem:[%s3690_s12 + $0x3d8] sm:$0xff] %vm2873_vm1, %v2864_v4 }
 0x51d   : > { %v2866_v56 = vpop.xlane.xlu2 %2865 }
 0x51e   : > { %2998 = vst.msk [vmem:[%s3690_s12 + $0x3e0] sm:$0xff] %vm2873_vm1, %v2866_v56 }
 0x525   : > { %v2868_v5 = vpop.xlane.xlu0 %2867 }
 0x526   : > { %2999 = vst.msk [vmem:[%s3690_s12 + $0x3e8] sm:$0xff] %vm2873_vm1, %v2868_v5 }
 0x52d   : > { %v2870_v24 = vpop.xlane.xlu1 %2869 }
 0x52e   : > { %3000 = vst.msk [vmem:[%s3690_s12 + $0x3f0] sm:$0xff] %vm2873_vm1, %v2870_v24 }
 0x535   : > { %v2872_v20 = vpop.xlane.xlu2 %2871 }
 0x536   : > { %3001 = vst.msk [vmem:[%s3690_s12 + $0x3f8] sm:$0xff] %vm2873_vm1, %v2872_v20 }
 0x537 PF: > { %s17_s23 = sadd.s32 1, %s3286_s23   ;;  %s3964_s21 = smov %s3282_s22 }
 0x538   : > { %p14_p8 = scmp.ge.s32.totalorder %s17_s23, 4   ;;  %s3965_s22 = smov %s3967_s25 }
 0x53a   :  { %16 = sbr.rel (!%p14_p8) target bundleno = 2 (0x2), region = 89 }
 0x53f   :  { %3023 = vsyncpa [#allocation4], 1 }
 0x540   :  { %3025 = vsyncpa [#allocation4 + $0x1], 1 }

</bundles_post_ra>
